<compile_context>
chip_gen: v7x
topology: tpu7x:2x2x1
jax: 0.10.0
libtpu: 0.0.40
codegen_flags: <defaults>
</compile_context>

<pallas_src>
import functools

import jax
import jax.numpy as jnp
from jax.experimental import pallas as pl
from jax.experimental.pallas import tpu as pltpu


def _round_up(n, m):
    return ((n + m - 1) // m) * m


# -----------------------------------------------------------------------------
# Pallas kernel: full forward pass (after embedding gather) for one batch tile.
# All feature dims are pre-padded to multiples of 128; the padded vocab lanes
# of vb2 carry -1e30, so no explicit mask is needed in-kernel.
# -----------------------------------------------------------------------------
def encoder_kernel(
    # SMEM scalars: [regression final bias, rating_weight]
    scalars_ref,
    # activations: concatenated+padded [user | item] embeddings, MXU dtype
    ui_ref,
    # fused [Merger | ContextMerger] user/item weights (KE, HP+CP) + Merger bias
    wmc_ref, bm_ref,
    # fused first layers [regression | review] (HP, 2*HP) + stacked bias
    rvw1_ref, rvb1_ref,
    # regression second layer + head row (1, HP)
    rw2_ref, rb2_ref, rw3_ref,
    # review second layer (HP, VP); vb2 padded lanes = -1e30
    vw2_ref, vb2_ref,
    # ContextMerger review weight (VP, CP) + bias
    cwr_ref, cbr_ref,
    # outputs (lane-dense slabs)
    reg_out_ref, rev_out_ref, ctx_out_ref,
    *, hp: int,
):
    ui = ui_ref[...]                                   # (TB, KE), MXU dtype
    mxu_dt = wmc_ref.dtype

    # ---- fused Merger + ContextMerger user/item dot: (TB, HP+CP) ----
    mc = jnp.dot(ui, wmc_ref[...], preferred_element_type=jnp.float32)
    merged = jax.nn.sigmoid(mc[:, :hp] + bm_ref[...])          # (TB, HP)
    ctx_ui = mc[:, hp:]                                         # (TB, CP)
    merged_m = merged.astype(mxu_dt)                   # cast once for MXU reuse

    # ---- fused first layers of regression + review models: (TB, 2*HP) ----
    hr = jax.nn.sigmoid(
        jnp.dot(merged_m, rvw1_ref[...], preferred_element_type=jnp.float32)
        + rvb1_ref[...]
    )
    h = hr[:, :hp]                                              # regression path
    r = hr[:, hp:]                                              # review path

    # ---- regression second layer + (H -> 1) head as VPU reduce ----
    h2 = (jnp.dot(h.astype(mxu_dt), rw2_ref[...], preferred_element_type=jnp.float32)
          + rb2_ref[...])
    reg = jnp.sum(h2 * rw3_ref[...], axis=-1, keepdims=True) + scalars_ref[0]  # (TB,1)
    reg_out_ref[...] = jnp.broadcast_to(reg, reg_out_ref.shape)

    # ---- review second layer (H -> V); padded lanes already at -1e30 ----
    rev = (jnp.dot(r.astype(mxu_dt), vw2_ref[...], preferred_element_type=jnp.float32)
           + vb2_ref[...])                                      # (TB, VP)

    # ---- LogSoftmax (padding underflows: exp(-1e30 - mx) == 0) ----
    mx = jnp.max(rev, axis=-1, keepdims=True)
    z = rev - mx
    lse = jnp.log(jnp.sum(jnp.exp(z), axis=-1, keepdims=True))
    rev_out_ref[...] = z - lse

    # ---- ContextMerger: tanh([u|i]@[Wu;Wi] + w_r*reg + rev@Wr + b) ----
    rating_w = scalars_ref[1]
    ctx = jnp.tanh(
        ctx_ui
        + rating_w * reg
        + jnp.dot(rev.astype(mxu_dt), cwr_ref[...], preferred_element_type=jnp.float32)
        + cbr_ref[...]
    )
    ctx_out_ref[...] = ctx


# -----------------------------------------------------------------------------
# One-time parameter packing: fuse paired/same-LHS weights, pad feature dims to
# multiples of 128, cast MXU operands to bf16 (biases / VPU path stay f32).
# -----------------------------------------------------------------------------
def pack_params(params, *, mxu_dtype=jnp.bfloat16):
    f32 = jnp.float32
    UL = params["user_embedding"].shape[1]
    IL = params["item_embedding"].shape[1]
    H = params["mwu"].shape[1]
    V = params["vw2"].shape[1]
    C = params["cwu"].shape[1]
    KE = _round_up(UL + IL, 128)
    HP = _round_up(H, 128)
    VP = _round_up(V, 128)
    CP = _round_up(C, 128)

    def pad2(w, rows, cols, dtype, fill=0.0):
        out = (jnp.full((rows, cols), fill, f32)
               .at[: w.shape[0], : w.shape[1]].set(w))
        return out.astype(dtype)

    # Fused [Merger | ContextMerger] user/item weights: (KE, HP+CP)
    wmc = (jnp.zeros((KE, HP + CP), f32)
           .at[:UL, :H].set(params["mwu"])
           .at[UL:UL + IL, :H].set(params["mwi"])
           .at[:UL, HP:HP + C].set(params["cwu"])
           .at[UL:UL + IL, HP:HP + C].set(params["cwi"])).astype(mxu_dtype)

    # Fused first layers [regression | review]: (HP, 2*HP) + stacked bias
    rvw1 = (jnp.zeros((HP, 2 * HP), f32)
            .at[:H, :H].set(params["rw1"])
            .at[:H, HP:HP + H].set(params["vw1"])).astype(mxu_dtype)
    rvb1 = (jnp.zeros((1, 2 * HP), f32)
            .at[:, :H].set(params["rb1"])
            .at[:, HP:HP + H].set(params["vb1"]))

    packed = dict(
        user_embedding=params["user_embedding"],
        item_embedding=params["item_embedding"],
        wmc=wmc,
        bm=pad2(params["mbi"], 1, HP, f32),
        rvw1=rvw1, rvb1=rvb1,
        rw2=pad2(params["rw2"], HP, HP, mxu_dtype),
        rb2=pad2(params["rb2"], 1, HP, f32),
        rw3=pad2(params["rw3"].reshape(1, -1), 1, HP, f32),   # VPU path: f32
        vw2=pad2(params["vw2"], HP, VP, mxu_dtype),
        # vb2 padded lanes carry -1e30 -> log-softmax mask baked into the bias.
        vb2=pad2(params["vb2"], 1, VP, f32, fill=-1e30),
        cwr=pad2(params["cwr"], VP, CP, mxu_dtype),
        cbr=pad2(params["cbr"], 1, CP, f32),
        scalars=jnp.array([params["rb3"][0, 0], params["crw"][0, 0]], f32),
    )
    dims = dict(UL=UL, IL=IL, H=H, V=V, C=C, KE=KE, HP=HP, VP=VP, CP=CP,
                mxu_dtype=mxu_dtype)
    return packed, dims


# -----------------------------------------------------------------------------
# Wrapper: embedding gather (JAX glue) + batch-tiled pallas_call.
# -----------------------------------------------------------------------------
def encoder_forward(packed, dims, input_user, input_item, *, tb=256):
    f32 = jnp.float32
    UL, IL, V, C = dims["UL"], dims["IL"], dims["V"], dims["C"]
    KE, HP, VP, CP = dims["KE"], dims["HP"], dims["VP"], dims["CP"]
    mxu_dtype = dims["mxu_dtype"]

    # Embedding lookups (plain-JAX glue), concat, pad to (BP, KE).
    u_emb = packed["user_embedding"][input_user]   # (B, UL)
    i_emb = packed["item_embedding"][input_item]   # (B, IL)
    B = u_emb.shape[0]
    # Cap the batch tile at the (8-aligned) batch so tiny batches don't pad to
    # a full 256-row tile; large batches keep tb rows per grid step.
    tb_eff = max(8, min(tb, _round_up(B, 8)))
    BP = _round_up(B, tb_eff)
    ui = (jnp.zeros((BP, KE), f32)
          .at[:B, :UL].set(u_emb)
          .at[:B, UL:UL + IL].set(i_emb)).astype(mxu_dtype)

    weights = (packed["wmc"], packed["bm"],
               packed["rvw1"], packed["rvb1"],
               packed["rw2"], packed["rb2"], packed["rw3"],
               packed["vw2"], packed["vb2"],
               packed["cwr"], packed["cbr"])

    def resident(a, mode):
        nd = a.ndim
        idx = lambda b, _nd=nd: (0,) * _nd
        if mode is None:
            return pl.BlockSpec(a.shape, idx)
        return pl.BlockSpec(a.shape, idx, pipeline_mode=mode)

    out_specs = (pl.BlockSpec((tb_eff, 128), lambda b: (b, 0)),
                 pl.BlockSpec((tb_eff, VP), lambda b: (b, 0)),
                 pl.BlockSpec((tb_eff, CP), lambda b: (b, 0)))
    out_shape = (jax.ShapeDtypeStruct((BP, 128), f32),
                 jax.ShapeDtypeStruct((BP, VP), f32),
                 jax.ShapeDtypeStruct((BP, CP), f32))

    def call(weight_mode):
        in_specs = ([pl.BlockSpec(memory_space=pltpu.MemorySpace.SMEM),  # scalars
                     pl.BlockSpec((tb_eff, KE), lambda b: (b, 0))]       # activations
                    + [resident(a, weight_mode) for a in weights])       # resident
        return pl.pallas_call(
            functools.partial(encoder_kernel, hp=HP),
            out_shape=out_shape,
            grid=(BP // tb_eff,),
            in_specs=in_specs,
            out_specs=out_specs,
            compiler_params=pltpu.CompilerParams(
                dimension_semantics=("parallel",),   # megacore batch sharding
                vmem_limit_bytes=64 * 1024 * 1024,
            ),
        )(packed["scalars"], ui, *weights)

    try:
        # Constant-index-map weights only need a single VMEM buffer.
        reg_p, rev_p, ctx_p = call(pl.Buffered(1))
    except Exception:
        # Graceful fallback if this jax build rejects single-buffered inputs.
        reg_p, rev_p, ctx_p = call(None)

    # Slice away batch / feature padding.
    return reg_p[:B, :1], rev_p[:B, :V], ctx_p[:B, :C]


# -----------------------------------------------------------------------------
# Deterministic parameter init (shapes follow the PyTorch __init__;
# weights stored as (in_features, out_features) == PyTorch weight transposed).
# n_regression_layers = 2, n_review_layers = 2.
# -----------------------------------------------------------------------------
def init_params(key, users_count, items_count, user_lf, item_lf,
                vocab, context, hidden):
    keys = jax.random.split(key, 32)
    k = iter(keys)

    def w(shape, scale=0.1):
        return (scale * jax.random.normal(next(k), shape)).astype(jnp.float32)

    return {
        "user_embedding": w((users_count, user_lf)),
        "item_embedding": w((items_count, item_lf)),
        # Merger
        "mwu": w((user_lf, hidden)),
        "mwi": w((item_lf, hidden)),
        "mbi": w((1, hidden)),
        # regression_model: Linear(H,H)+Sigmoid, Linear(H,H), Linear(H,1)
        "rw1": w((hidden, hidden)), "rb1": w((1, hidden)),
        "rw2": w((hidden, hidden)), "rb2": w((1, hidden)),
        "rw3": w((hidden, 1)),      "rb3": w((1, 1)),
        # review_model: Linear(H,H)+Sigmoid, Linear(H,V)
        "vw1": w((hidden, hidden)), "vb1": w((1, hidden)),
        "vw2": w((hidden, vocab)),  "vb2": w((1, vocab)),
        # ContextMerger
        "cwu": w((user_lf, context)),
        "cwi": w((item_lf, context)),
        "crw": w((1, 1)),
        "cwr": w((vocab, context)),
        "cbr": w((1, context)),
    }


# -----------------------------------------------------------------------------
# Pure-JAX f32 reference for sanity checking.
# -----------------------------------------------------------------------------
def reference_forward(p, input_user, input_item):
    u = p["user_embedding"][input_user]
    it = p["item_embedding"][input_item]
    merged = jax.nn.sigmoid(u @ p["mwu"] + it @ p["mwi"] + p["mbi"])
    h = jax.nn.sigmoid(merged @ p["rw1"] + p["rb1"])
    h = h @ p["rw2"] + p["rb2"]
    reg = h @ p["rw3"] + p["rb3"]
    r = jax.nn.sigmoid(merged @ p["vw1"] + p["vb1"])
    rev = r @ p["vw2"] + p["vb2"]
    revls = jax.nn.log_softmax(rev, axis=-1)
    ctx = jnp.tanh(u @ p["cwu"] + it @ p["cwi"] + p["crw"][0, 0] * reg
                   + rev @ p["cwr"] + p["cbr"])
    return reg, revls, ctx


if __name__ == "__main__":
    # Small synthetic config (n_regression_layers=2, n_review_layers=2).
    USERS, ITEMS = 10, 12
    USER_LF, ITEM_LF = 16, 16
    VOCAB, CONTEXT, HIDDEN = 64, 32, 32
    B = 8

    key = jax.random.PRNGKey(0)
    pkey, ukey, ikey = jax.random.split(key, 3)
    params = init_params(pkey, USERS, ITEMS, USER_LF, ITEM_LF,
                         VOCAB, CONTEXT, HIDDEN)

    input_user = jax.random.randint(ukey, (B,), 0, USERS, dtype=jnp.int32)
    input_item = jax.random.randint(ikey, (B,), 0, ITEMS, dtype=jnp.int32)

    packed, dims = pack_params(params, mxu_dtype=jnp.bfloat16)
    reg, revls, ctx = encoder_forward(packed, dims, input_user, input_item, tb=256)
    jax.block_until_ready((reg, revls, ctx))

    # Sanity check vs pure-JAX f32 reference (bf16 MXU operands -> loose tol).
    reg_r, revls_r, ctx_r = reference_forward(params, input_user, input_item)
    assert jnp.allclose(reg, reg_r, atol=2e-2, rtol=2e-2), float(jnp.max(jnp.abs(reg - reg_r)))
    assert jnp.allclose(revls, revls_r, atol=2e-2, rtol=2e-2), float(jnp.max(jnp.abs(revls - revls_r)))
    assert jnp.allclose(ctx, ctx_r, atol=2e-2, rtol=2e-2), float(jnp.max(jnp.abs(ctx - ctx_r)))

    print("KERNEL_OK")
</pallas_src>

<mosaic_0001>
module attributes {stable_mosaic.version = 11 : i64} {
  func.func @encoder_kernel(%arg0: i32, %arg1: memref<2xf32, #tpu.memory_space<smem>>, %arg2: memref<8x128xbf16, #tpu.memory_space<vmem>>, %arg3: memref<128x256xbf16, #tpu.memory_space<vmem>>, %arg4: memref<1x128xf32, #tpu.memory_space<vmem>>, %arg5: memref<128x256xbf16, #tpu.memory_space<vmem>>, %arg6: memref<1x256xf32, #tpu.memory_space<vmem>>, %arg7: memref<128x128xbf16, #tpu.memory_space<vmem>>, %arg8: memref<1x128xf32, #tpu.memory_space<vmem>>, %arg9: memref<1x128xf32, #tpu.memory_space<vmem>>, %arg10: memref<128x128xbf16, #tpu.memory_space<vmem>>, %arg11: memref<1x128xf32, #tpu.memory_space<vmem>>, %arg12: memref<128x128xbf16, #tpu.memory_space<vmem>>, %arg13: memref<1x128xf32, #tpu.memory_space<vmem>>, %arg14: memref<8x128xf32, #tpu.memory_space<vmem>>, %arg15: memref<8x128xf32, #tpu.memory_space<vmem>>, %arg16: memref<8x128xf32, #tpu.memory_space<vmem>>) attributes {dimension_semantics = [#tpu.dimension_semantics<parallel>], iteration_bounds = array<i64: 1>, scalar_prefetch = 0 : i64, scratch_operands = 0 : i64, tpu.core_type = #tpu.core_type<tc>, window_params = [{transform_indices = @transform_0, window_bounds = array<i64: 2>}, {transform_indices = @transform_1, window_bounds = array<i64: 8, 128>}, {pipeline_mode = #tpu.pipeline_mode<synchronous>, transform_indices = @transform_2, window_bounds = array<i64: 128, 256>}, {pipeline_mode = #tpu.pipeline_mode<synchronous>, transform_indices = @transform_3, window_bounds = array<i64: 1, 128>}, {pipeline_mode = #tpu.pipeline_mode<synchronous>, transform_indices = @transform_4, window_bounds = array<i64: 128, 256>}, {pipeline_mode = #tpu.pipeline_mode<synchronous>, transform_indices = @transform_5, window_bounds = array<i64: 1, 256>}, {pipeline_mode = #tpu.pipeline_mode<synchronous>, transform_indices = @transform_6, window_bounds = array<i64: 128, 128>}, {pipeline_mode = #tpu.pipeline_mode<synchronous>, transform_indices = @transform_7, window_bounds = array<i64: 1, 128>}, {pipeline_mode = #tpu.pipeline_mode<synchronous>, transform_indices = @transform_8, window_bounds = array<i64: 1, 128>}, {pipeline_mode = #tpu.pipeline_mode<synchronous>, transform_indices = @transform_9, window_bounds = array<i64: 128, 128>}, {pipeline_mode = #tpu.pipeline_mode<synchronous>, transform_indices = @transform_10, window_bounds = array<i64: 1, 128>}, {pipeline_mode = #tpu.pipeline_mode<synchronous>, transform_indices = @transform_11, window_bounds = array<i64: 128, 128>}, {pipeline_mode = #tpu.pipeline_mode<synchronous>, transform_indices = @transform_12, window_bounds = array<i64: 1, 128>}, {transform_indices = @transform_13, window_bounds = array<i64: 8, 128>}, {transform_indices = @transform_14, window_bounds = array<i64: 8, 128>}, {transform_indices = @transform_15, window_bounds = array<i64: 8, 128>}]} {
    %c0 = arith.constant 0 : index
    %c0_0 = arith.constant 0 : index
    %0 = vector.load %arg2[%c0, %c0_0] : memref<8x128xbf16, #tpu.memory_space<vmem>>, vector<8x128xbf16>
    %c0_1 = arith.constant 0 : index
    %c0_2 = arith.constant 0 : index
    %1 = vector.load %arg3[%c0_1, %c0_2] : memref<128x256xbf16, #tpu.memory_space<vmem>>, vector<128x256xbf16>
    %cst = arith.constant dense<0.000000e+00> : vector<8x256xf32>
    %2 = tpu.matmul %0, %1, %cst {dimension_numbers = #tpu.dot_dimension_numbers<[1], [0], [0], [1], [0, 0, 1, 1], [], []>} : vector<8x128xbf16>, vector<128x256xbf16>, vector<8x256xf32> -> vector<8x256xf32>
    %3 = vector.extract_strided_slice %2 {offsets = [0, 0], sizes = [8, 128], strides = [1, 1]} : vector<8x256xf32> to vector<8x128xf32>
    %c0_3 = arith.constant 0 : index
    %c0_4 = arith.constant 0 : index
    %4 = vector.load %arg4[%c0_3, %c0_4] : memref<1x128xf32, #tpu.memory_space<vmem>>, vector<1x128xf32>
    %5 = vector.broadcast %4 : vector<1x128xf32> to vector<8x128xf32>
    %6 = arith.addf %3, %5 : vector<8x128xf32>
    %7 = arith.negf %6 : vector<8x128xf32>
    %8 = math.exp %7 : vector<8x128xf32>
    %cst_5 = arith.constant 1.000000e+00 : f32
    %9 = vector.broadcast %cst_5 : f32 to vector<8x128xf32>
    %10 = arith.addf %9, %8 : vector<8x128xf32>
    %11 = arith.divf %9, %10 : vector<8x128xf32>
    %12 = vector.extract_strided_slice %2 {offsets = [0, 128], sizes = [8, 128], strides = [1, 1]} : vector<8x256xf32> to vector<8x128xf32>
    %13 = arith.truncf %11 : vector<8x128xf32> to vector<8x128xbf16>
    %c0_6 = arith.constant 0 : index
    %c0_7 = arith.constant 0 : index
    %14 = vector.load %arg5[%c0_6, %c0_7] : memref<128x256xbf16, #tpu.memory_space<vmem>>, vector<128x256xbf16>
    %cst_8 = arith.constant dense<0.000000e+00> : vector<8x256xf32>
    %15 = tpu.matmul %13, %14, %cst_8 {dimension_numbers = #tpu.dot_dimension_numbers<[1], [0], [0], [1], [0, 0, 1, 1], [], []>} : vector<8x128xbf16>, vector<128x256xbf16>, vector<8x256xf32> -> vector<8x256xf32>
    %c0_9 = arith.constant 0 : index
    %c0_10 = arith.constant 0 : index
    %16 = vector.load %arg6[%c0_9, %c0_10] : memref<1x256xf32, #tpu.memory_space<vmem>>, vector<1x256xf32>
    %17 = vector.broadcast %16 : vector<1x256xf32> to vector<8x256xf32>
    %18 = arith.addf %15, %17 : vector<8x256xf32>
    %19 = arith.negf %18 : vector<8x256xf32>
    %20 = math.exp %19 : vector<8x256xf32>
    %cst_11 = arith.constant 1.000000e+00 : f32
    %21 = vector.broadcast %cst_11 : f32 to vector<8x256xf32>
    %22 = arith.addf %21, %20 : vector<8x256xf32>
    %23 = arith.divf %21, %22 : vector<8x256xf32>
    %24 = vector.extract_strided_slice %23 {offsets = [0, 0], sizes = [8, 128], strides = [1, 1]} : vector<8x256xf32> to vector<8x128xf32>
    %25 = vector.extract_strided_slice %23 {offsets = [0, 128], sizes = [8, 128], strides = [1, 1]} : vector<8x256xf32> to vector<8x128xf32>
    %26 = arith.truncf %24 : vector<8x128xf32> to vector<8x128xbf16>
    %c0_12 = arith.constant 0 : index
    %c0_13 = arith.constant 0 : index
    %27 = vector.load %arg7[%c0_12, %c0_13] : memref<128x128xbf16, #tpu.memory_space<vmem>>, vector<128x128xbf16>
    %cst_14 = arith.constant dense<0.000000e+00> : vector<8x128xf32>
    %28 = tpu.matmul %26, %27, %cst_14 {dimension_numbers = #tpu.dot_dimension_numbers<[1], [0], [0], [1], [0, 0, 1, 1], [], []>} : vector<8x128xbf16>, vector<128x128xbf16>, vector<8x128xf32> -> vector<8x128xf32>
    %c0_15 = arith.constant 0 : index
    %c0_16 = arith.constant 0 : index
    %29 = vector.load %arg8[%c0_15, %c0_16] : memref<1x128xf32, #tpu.memory_space<vmem>>, vector<1x128xf32>
    %30 = vector.broadcast %29 : vector<1x128xf32> to vector<8x128xf32>
    %31 = arith.addf %28, %30 : vector<8x128xf32>
    %c0_17 = arith.constant 0 : index
    %c0_18 = arith.constant 0 : index
    %32 = vector.load %arg9[%c0_17, %c0_18] : memref<1x128xf32, #tpu.memory_space<vmem>>, vector<1x128xf32>
    %33 = vector.broadcast %32 : vector<1x128xf32> to vector<8x128xf32>
    %34 = arith.mulf %31, %33 : vector<8x128xf32>
    %cst_19 = arith.constant dense<0.000000e+00> : vector<8xf32>
    %35 = vector.multi_reduction <add>, %34, %cst_19 [1] : vector<8x128xf32> to vector<8xf32>
    %36 = vector.shape_cast %35 : vector<8xf32> to vector<8x1xf32>
    %c0_20 = arith.constant 0 : index
    %37 = memref.load %arg1[%c0_20] : memref<2xf32, #tpu.memory_space<smem>>
    %38 = vector.broadcast %37 : f32 to vector<8x1xf32>
    %39 = arith.addf %36, %38 : vector<8x1xf32>
    %40 = vector.shape_cast %39 : vector<8x1xf32> to vector<8x1xf32>
    %41 = vector.broadcast %40 : vector<8x1xf32> to vector<8x128xf32>
    %c0_21 = arith.constant 0 : index
    %c0_22 = arith.constant 0 : index
    %42 = vector.load %arg14[%c0_21, %c0_22] : memref<8x128xf32, #tpu.memory_space<vmem>>, vector<8x128xf32>
    tpu.vector_store %arg14[%c0_21, %c0_22], %41 {strides = array<i32>} : memref<8x128xf32, #tpu.memory_space<vmem>>, vector<8x128xf32>,
    %43 = arith.truncf %25 : vector<8x128xf32> to vector<8x128xbf16>
    %c0_23 = arith.constant 0 : index
    %c0_24 = arith.constant 0 : index
    %44 = vector.load %arg10[%c0_23, %c0_24] : memref<128x128xbf16, #tpu.memory_space<vmem>>, vector<128x128xbf16>
    %cst_25 = arith.constant dense<0.000000e+00> : vector<8x128xf32>
    %45 = tpu.matmul %43, %44, %cst_25 {dimension_numbers = #tpu.dot_dimension_numbers<[1], [0], [0], [1], [0, 0, 1, 1], [], []>} : vector<8x128xbf16>, vector<128x128xbf16>, vector<8x128xf32> -> vector<8x128xf32>
    %c0_26 = arith.constant 0 : index
    %c0_27 = arith.constant 0 : index
    %46 = vector.load %arg11[%c0_26, %c0_27] : memref<1x128xf32, #tpu.memory_space<vmem>>, vector<1x128xf32>
    %47 = vector.broadcast %46 : vector<1x128xf32> to vector<8x128xf32>
    %48 = arith.addf %45, %47 : vector<8x128xf32>
    %cst_28 = arith.constant dense<0xFF800000> : vector<8xf32>
    %49 = vector.multi_reduction <maximumf>, %48, %cst_28 [1] : vector<8x128xf32> to vector<8xf32>
    %50 = vector.shape_cast %49 : vector<8xf32> to vector<8x1xf32>
    %51 = vector.broadcast %50 : vector<8x1xf32> to vector<8x128xf32>
    %52 = arith.subf %48, %51 : vector<8x128xf32>
    %53 = math.exp %52 : vector<8x128xf32>
    %cst_29 = arith.constant dense<0.000000e+00> : vector<8xf32>
    %54 = vector.multi_reduction <add>, %53, %cst_29 [1] : vector<8x128xf32> to vector<8xf32>
    %55 = vector.shape_cast %54 : vector<8xf32> to vector<8x1xf32>
    %56 = math.log %55 : vector<8x1xf32>
    %57 = vector.broadcast %56 : vector<8x1xf32> to vector<8x128xf32>
    %58 = arith.subf %52, %57 : vector<8x128xf32>
    %c0_30 = arith.constant 0 : index
    %c0_31 = arith.constant 0 : index
    %59 = vector.load %arg15[%c0_30, %c0_31] : memref<8x128xf32, #tpu.memory_space<vmem>>, vector<8x128xf32>
    tpu.vector_store %arg15[%c0_30, %c0_31], %58 {strides = array<i32>} : memref<8x128xf32, #tpu.memory_space<vmem>>, vector<8x128xf32>,
    %c1 = arith.constant 1 : index
    %60 = memref.load %arg1[%c1] : memref<2xf32, #tpu.memory_space<smem>>
    %61 = vector.broadcast %60 : f32 to vector<8x1xf32>
    %62 = arith.mulf %61, %39 : vector<8x1xf32>
    %63 = vector.broadcast %62 : vector<8x1xf32> to vector<8x128xf32>
    %64 = arith.addf %12, %63 : vector<8x128xf32>
    %65 = arith.truncf %48 : vector<8x128xf32> to vector<8x128xbf16>
    %c0_32 = arith.constant 0 : index
    %c0_33 = arith.constant 0 : index
    %66 = vector.load %arg12[%c0_32, %c0_33] : memref<128x128xbf16, #tpu.memory_space<vmem>>, vector<128x128xbf16>
    %cst_34 = arith.constant dense<0.000000e+00> : vector<8x128xf32>
    %67 = tpu.matmul %65, %66, %cst_34 {dimension_numbers = #tpu.dot_dimension_numbers<[1], [0], [0], [1], [0, 0, 1, 1], [], []>} : vector<8x128xbf16>, vector<128x128xbf16>, vector<8x128xf32> -> vector<8x128xf32>
    %68 = arith.addf %64, %67 : vector<8x128xf32>
    %c0_35 = arith.constant 0 : index
    %c0_36 = arith.constant 0 : index
    %69 = vector.load %arg13[%c0_35, %c0_36] : memref<1x128xf32, #tpu.memory_space<vmem>>, vector<1x128xf32>
    %70 = vector.broadcast %69 : vector<1x128xf32> to vector<8x128xf32>
    %71 = arith.addf %68, %70 : vector<8x128xf32>
    %72 = math.tanh %71 : vector<8x128xf32>
    %c0_37 = arith.constant 0 : index
    %c0_38 = arith.constant 0 : index
    %73 = vector.load %arg16[%c0_37, %c0_38] : memref<8x128xf32, #tpu.memory_space<vmem>>, vector<8x128xf32>
    tpu.vector_store %arg16[%c0_37, %c0_38], %72 {strides = array<i32>} : memref<8x128xf32, #tpu.memory_space<vmem>>, vector<8x128xf32>,
    return
  }
  func.func @transform_0(%arg0: i32) -> i32 {
    %c0_i32 = arith.constant 0 : i32
    %c0_i32_0 = arith.constant 0 : i32
    return %c0_i32 : i32
  }
  func.func @transform_1(%arg0: i32) -> (i32, i32) {
    %c0_i32 = arith.constant 0 : i32
    %c0_i32_0 = arith.constant 0 : i32
    return %arg0, %c0_i32 : i32, i32
  }
  func.func @transform_2(%arg0: i32) -> (i32, i32) {
    %c0_i32 = arith.constant 0 : i32
    %c0_i32_0 = arith.constant 0 : i32
    %c0_i32_1 = arith.constant 0 : i32
    return %c0_i32, %c0_i32_0 : i32, i32
  }
  func.func @transform_3(%arg0: i32) -> (i32, i32) {
    %c0_i32 = arith.constant 0 : i32
    %c0_i32_0 = arith.constant 0 : i32
    %c0_i32_1 = arith.constant 0 : i32
    return %c0_i32, %c0_i32_0 : i32, i32
  }
  func.func @transform_4(%arg0: i32) -> (i32, i32) {
    %c0_i32 = arith.constant 0 : i32
    %c0_i32_0 = arith.constant 0 : i32
    %c0_i32_1 = arith.constant 0 : i32
    return %c0_i32, %c0_i32_0 : i32, i32
  }
  func.func @transform_5(%arg0: i32) -> (i32, i32) {
    %c0_i32 = arith.constant 0 : i32
    %c0_i32_0 = arith.constant 0 : i32
    %c0_i32_1 = arith.constant 0 : i32
    return %c0_i32, %c0_i32_0 : i32, i32
  }
  func.func @transform_6(%arg0: i32) -> (i32, i32) {
    %c0_i32 = arith.constant 0 : i32
    %c0_i32_0 = arith.constant 0 : i32
    %c0_i32_1 = arith.constant 0 : i32
    return %c0_i32, %c0_i32_0 : i32, i32
  }
  func.func @transform_7(%arg0: i32) -> (i32, i32) {
    %c0_i32 = arith.constant 0 : i32
    %c0_i32_0 = arith.constant 0 : i32
    %c0_i32_1 = arith.constant 0 : i32
    return %c0_i32, %c0_i32_0 : i32, i32
  }
  func.func @transform_8(%arg0: i32) -> (i32, i32) {
    %c0_i32 = arith.constant 0 : i32
    %c0_i32_0 = arith.constant 0 : i32
    %c0_i32_1 = arith.constant 0 : i32
    return %c0_i32, %c0_i32_0 : i32, i32
  }
  func.func @transform_9(%arg0: i32) -> (i32, i32) {
    %c0_i32 = arith.constant 0 : i32
    %c0_i32_0 = arith.constant 0 : i32
    %c0_i32_1 = arith.constant 0 : i32
    return %c0_i32, %c0_i32_0 : i32, i32
  }
  func.func @transform_10(%arg0: i32) -> (i32, i32) {
    %c0_i32 = arith.constant 0 : i32
    %c0_i32_0 = arith.constant 0 : i32
    %c0_i32_1 = arith.constant 0 : i32
    return %c0_i32, %c0_i32_0 : i32, i32
  }
  func.func @transform_11(%arg0: i32) -> (i32, i32) {
    %c0_i32 = arith.constant 0 : i32
    %c0_i32_0 = arith.constant 0 : i32
    %c0_i32_1 = arith.constant 0 : i32
    return %c0_i32, %c0_i32_0 : i32, i32
  }
  func.func @transform_12(%arg0: i32) -> (i32, i32) {
    %c0_i32 = arith.constant 0 : i32
    %c0_i32_0 = arith.constant 0 : i32
    %c0_i32_1 = arith.constant 0 : i32
    return %c0_i32, %c0_i32_0 : i32, i32
  }
  func.func @transform_13(%arg0: i32) -> (i32, i32) {
    %c0_i32 = arith.constant 0 : i32
    %c0_i32_0 = arith.constant 0 : i32
    return %arg0, %c0_i32 : i32, i32
  }
  func.func @transform_14(%arg0: i32) -> (i32, i32) {
    %c0_i32 = arith.constant 0 : i32
    %c0_i32_0 = arith.constant 0 : i32
    return %arg0, %c0_i32 : i32, i32
  }
  func.func @transform_15(%arg0: i32) -> (i32, i32) {
    %c0_i32 = arith.constant 0 : i32
    %c0_i32_0 = arith.constant 0 : i32
    return %arg0, %c0_i32 : i32, i32
  }
}

module attributes {stable_mosaic.version = 11 : i64} {
  func.func @encoder_kernel(%arg0: i32, %arg1: memref<2xf32, #tpu.memory_space<smem>>, %arg2: memref<8x128xbf16, #tpu.memory_space<vmem>>, %arg3: memref<128x256xbf16, #tpu.memory_space<vmem>>, %arg4: memref<1x128xf32, #tpu.memory_space<vmem>>, %arg5: memref<128x256xbf16, #tpu.memory_space<vmem>>, %arg6: memref<1x256xf32, #tpu.memory_space<vmem>>, %arg7: memref<128x128xbf16, #tpu.memory_space<vmem>>, %arg8: memref<1x128xf32, #tpu.memory_space<vmem>>, %arg9: memref<1x128xf32, #tpu.memory_space<vmem>>, %arg10: memref<128x128xbf16, #tpu.memory_space<vmem>>, %arg11: memref<1x128xf32, #tpu.memory_space<vmem>>, %arg12: memref<128x128xbf16, #tpu.memory_space<vmem>>, %arg13: memref<1x128xf32, #tpu.memory_space<vmem>>, %arg14: memref<8x128xf32, #tpu.memory_space<vmem>>, %arg15: memref<8x128xf32, #tpu.memory_space<vmem>>, %arg16: memref<8x128xf32, #tpu.memory_space<vmem>>) attributes {dimension_semantics = [#tpu.dimension_semantics<parallel>], iteration_bounds = array<i64: 1>, scalar_prefetch = 0 : i64, scratch_operands = 0 : i64, tpu.core_type = #tpu.core_type<tc>, window_params = [{transform_indices = @transform_0, window_bounds = array<i64: 2>}, {transform_indices = @transform_1, window_bounds = array<i64: 8, 128>}, {pipeline_mode = #tpu.pipeline_mode<synchronous>, transform_indices = @transform_2, window_bounds = array<i64: 128, 256>}, {pipeline_mode = #tpu.pipeline_mode<synchronous>, transform_indices = @transform_3, window_bounds = array<i64: 1, 128>}, {pipeline_mode = #tpu.pipeline_mode<synchronous>, transform_indices = @transform_4, window_bounds = array<i64: 128, 256>}, {pipeline_mode = #tpu.pipeline_mode<synchronous>, transform_indices = @transform_5, window_bounds = array<i64: 1, 256>}, {pipeline_mode = #tpu.pipeline_mode<synchronous>, transform_indices = @transform_6, window_bounds = array<i64: 128, 128>}, {pipeline_mode = #tpu.pipeline_mode<synchronous>, transform_indices = @transform_7, window_bounds = array<i64: 1, 128>}, {pipeline_mode = #tpu.pipeline_mode<synchronous>, transform_indices = @transform_8, window_bounds = array<i64: 1, 128>}, {pipeline_mode = #tpu.pipeline_mode<synchronous>, transform_indices = @transform_9, window_bounds = array<i64: 128, 128>}, {pipeline_mode = #tpu.pipeline_mode<synchronous>, transform_indices = @transform_10, window_bounds = array<i64: 1, 128>}, {pipeline_mode = #tpu.pipeline_mode<synchronous>, transform_indices = @transform_11, window_bounds = array<i64: 128, 128>}, {pipeline_mode = #tpu.pipeline_mode<synchronous>, transform_indices = @transform_12, window_bounds = array<i64: 1, 128>}, {transform_indices = @transform_13, window_bounds = array<i64: 8, 128>}, {transform_indices = @transform_14, window_bounds = array<i64: 8, 128>}, {transform_indices = @transform_15, window_bounds = array<i64: 8, 128>}]} {
    %c0 = arith.constant 0 : index
    %c0_0 = arith.constant 0 : index
    %0 = vector.load %arg2[%c0, %c0_0] : memref<8x128xbf16, #tpu.memory_space<vmem>>, vector<8x128xbf16>
    %c0_1 = arith.constant 0 : index
    %c0_2 = arith.constant 0 : index
    %1 = vector.load %arg3[%c0_1, %c0_2] : memref<128x256xbf16, #tpu.memory_space<vmem>>, vector<128x256xbf16>
    %cst = arith.constant dense<0.000000e+00> : vector<8x256xf32>
    %2 = tpu.matmul %0, %1, %cst {dimension_numbers = #tpu.dot_dimension_numbers<[1], [0], [0], [1], [0, 0, 1, 1], [], []>} : vector<8x128xbf16>, vector<128x256xbf16>, vector<8x256xf32> -> vector<8x256xf32>
    %3 = vector.extract_strided_slice %2 {offsets = [0, 0], sizes = [8, 128], strides = [1, 1]} : vector<8x256xf32> to vector<8x128xf32>
    %c0_3 = arith.constant 0 : index
    %c0_4 = arith.constant 0 : index
    %4 = vector.load %arg4[%c0_3, %c0_4] : memref<1x128xf32, #tpu.memory_space<vmem>>, vector<1x128xf32>
    %5 = vector.broadcast %4 : vector<1x128xf32> to vector<8x128xf32>
    %6 = arith.addf %3, %5 : vector<8x128xf32>
    %7 = arith.negf %6 : vector<8x128xf32>
    %8 = math.exp %7 : vector<8x128xf32>
    %cst_5 = arith.constant 1.000000e+00 : f32
    %9 = vector.broadcast %cst_5 : f32 to vector<8x128xf32>
    %10 = arith.addf %9, %8 : vector<8x128xf32>
    %11 = arith.divf %9, %10 : vector<8x128xf32>
    %12 = vector.extract_strided_slice %2 {offsets = [0, 128], sizes = [8, 128], strides = [1, 1]} : vector<8x256xf32> to vector<8x128xf32>
    %13 = arith.truncf %11 : vector<8x128xf32> to vector<8x128xbf16>
    %c0_6 = arith.constant 0 : index
    %c0_7 = arith.constant 0 : index
    %14 = vector.load %arg5[%c0_6, %c0_7] : memref<128x256xbf16, #tpu.memory_space<vmem>>, vector<128x256xbf16>
    %cst_8 = arith.constant dense<0.000000e+00> : vector<8x256xf32>
    %15 = tpu.matmul %13, %14, %cst_8 {dimension_numbers = #tpu.dot_dimension_numbers<[1], [0], [0], [1], [0, 0, 1, 1], [], []>} : vector<8x128xbf16>, vector<128x256xbf16>, vector<8x256xf32> -> vector<8x256xf32>
    %c0_9 = arith.constant 0 : index
    %c0_10 = arith.constant 0 : index
    %16 = vector.load %arg6[%c0_9, %c0_10] : memref<1x256xf32, #tpu.memory_space<vmem>>, vector<1x256xf32>
    %17 = vector.broadcast %16 : vector<1x256xf32> to vector<8x256xf32>
    %18 = arith.addf %15, %17 : vector<8x256xf32>
    %19 = arith.negf %18 : vector<8x256xf32>
    %20 = math.exp %19 : vector<8x256xf32>
    %cst_11 = arith.constant 1.000000e+00 : f32
    %21 = vector.broadcast %cst_11 : f32 to vector<8x256xf32>
    %22 = arith.addf %21, %20 : vector<8x256xf32>
    %23 = arith.divf %21, %22 : vector<8x256xf32>
    %24 = vector.extract_strided_slice %23 {offsets = [0, 0], sizes = [8, 128], strides = [1, 1]} : vector<8x256xf32> to vector<8x128xf32>
    %25 = vector.extract_strided_slice %23 {offsets = [0, 128], sizes = [8, 128], strides = [1, 1]} : vector<8x256xf32> to vector<8x128xf32>
    %26 = arith.truncf %24 : vector<8x128xf32> to vector<8x128xbf16>
    %c0_12 = arith.constant 0 : index
    %c0_13 = arith.constant 0 : index
    %27 = vector.load %arg7[%c0_12, %c0_13] : memref<128x128xbf16, #tpu.memory_space<vmem>>, vector<128x128xbf16>
    %cst_14 = arith.constant dense<0.000000e+00> : vector<8x128xf32>
    %28 = tpu.matmul %26, %27, %cst_14 {dimension_numbers = #tpu.dot_dimension_numbers<[1], [0], [0], [1], [0, 0, 1, 1], [], []>} : vector<8x128xbf16>, vector<128x128xbf16>, vector<8x128xf32> -> vector<8x128xf32>
    %c0_15 = arith.constant 0 : index
    %c0_16 = arith.constant 0 : index
    %29 = vector.load %arg8[%c0_15, %c0_16] : memref<1x128xf32, #tpu.memory_space<vmem>>, vector<1x128xf32>
    %30 = vector.broadcast %29 : vector<1x128xf32> to vector<8x128xf32>
    %31 = arith.addf %28, %30 : vector<8x128xf32>
    %c0_17 = arith.constant 0 : index
    %c0_18 = arith.constant 0 : index
    %32 = vector.load %arg9[%c0_17, %c0_18] : memref<1x128xf32, #tpu.memory_space<vmem>>, vector<1x128xf32>
    %33 = vector.broadcast %32 : vector<1x128xf32> to vector<8x128xf32>
    %34 = arith.mulf %31, %33 : vector<8x128xf32>
    %cst_19 = arith.constant dense<0.000000e+00> : vector<8xf32>
    %35 = vector.multi_reduction <add>, %34, %cst_19 [1] : vector<8x128xf32> to vector<8xf32>
    %36 = vector.shape_cast %35 : vector<8xf32> to vector<8x1xf32>
    %c0_20 = arith.constant 0 : index
    %37 = memref.load %arg1[%c0_20] : memref<2xf32, #tpu.memory_space<smem>>
    %38 = vector.broadcast %37 : f32 to vector<8x1xf32>
    %39 = arith.addf %36, %38 : vector<8x1xf32>
    %40 = vector.shape_cast %39 : vector<8x1xf32> to vector<8x1xf32>
    %41 = vector.broadcast %40 : vector<8x1xf32> to vector<8x128xf32>
    %c0_21 = arith.constant 0 : index
    %c0_22 = arith.constant 0 : index
    %42 = vector.load %arg14[%c0_21, %c0_22] : memref<8x128xf32, #tpu.memory_space<vmem>>, vector<8x128xf32>
    tpu.vector_store %arg14[%c0_21, %c0_22], %41 {strides = array<i32>} : memref<8x128xf32, #tpu.memory_space<vmem>>, vector<8x128xf32>,
    %43 = arith.truncf %25 : vector<8x128xf32> to vector<8x128xbf16>
    %c0_23 = arith.constant 0 : index
    %c0_24 = arith.constant 0 : index
    %44 = vector.load %arg10[%c0_23, %c0_24] : memref<128x128xbf16, #tpu.memory_space<vmem>>, vector<128x128xbf16>
    %cst_25 = arith.constant dense<0.000000e+00> : vector<8x128xf32>
    %45 = tpu.matmul %43, %44, %cst_25 {dimension_numbers = #tpu.dot_dimension_numbers<[1], [0], [0], [1], [0, 0, 1, 1], [], []>} : vector<8x128xbf16>, vector<128x128xbf16>, vector<8x128xf32> -> vector<8x128xf32>
    %c0_26 = arith.constant 0 : index
    %c0_27 = arith.constant 0 : index
    %46 = vector.load %arg11[%c0_26, %c0_27] : memref<1x128xf32, #tpu.memory_space<vmem>>, vector<1x128xf32>
    %47 = vector.broadcast %46 : vector<1x128xf32> to vector<8x128xf32>
    %48 = arith.addf %45, %47 : vector<8x128xf32>
    %cst_28 = arith.constant dense<0xFF800000> : vector<8xf32>
    %49 = vector.multi_reduction <maximumf>, %48, %cst_28 [1] : vector<8x128xf32> to vector<8xf32>
    %50 = vector.shape_cast %49 : vector<8xf32> to vector<8x1xf32>
    %51 = vector.broadcast %50 : vector<8x1xf32> to vector<8x128xf32>
    %52 = arith.subf %48, %51 : vector<8x128xf32>
    %53 = math.exp %52 : vector<8x128xf32>
    %cst_29 = arith.constant dense<0.000000e+00> : vector<8xf32>
    %54 = vector.multi_reduction <add>, %53, %cst_29 [1] : vector<8x128xf32> to vector<8xf32>
    %55 = vector.shape_cast %54 : vector<8xf32> to vector<8x1xf32>
    %56 = math.log %55 : vector<8x1xf32>
    %57 = vector.broadcast %56 : vector<8x1xf32> to vector<8x128xf32>
    %58 = arith.subf %52, %57 : vector<8x128xf32>
    %c0_30 = arith.constant 0 : index
    %c0_31 = arith.constant 0 : index
    %59 = vector.load %arg15[%c0_30, %c0_31] : memref<8x128xf32, #tpu.memory_space<vmem>>, vector<8x128xf32>
    tpu.vector_store %arg15[%c0_30, %c0_31], %58 {strides = array<i32>} : memref<8x128xf32, #tpu.memory_space<vmem>>, vector<8x128xf32>,
    %c1 = arith.constant 1 : index
    %60 = memref.load %arg1[%c1] : memref<2xf32, #tpu.memory_space<smem>>
    %61 = vector.broadcast %60 : f32 to vector<8x1xf32>
    %62 = arith.mulf %61, %39 : vector<8x1xf32>
    %63 = vector.broadcast %62 : vector<8x1xf32> to vector<8x128xf32>
    %64 = arith.addf %12, %63 : vector<8x128xf32>
    %65 = arith.truncf %48 : vector<8x128xf32> to vector<8x128xbf16>
    %c0_32 = arith.constant 0 : index
    %c0_33 = arith.constant 0 : index
    %66 = vector.load %arg12[%c0_32, %c0_33] : memref<128x128xbf16, #tpu.memory_space<vmem>>, vector<128x128xbf16>
    %cst_34 = arith.constant dense<0.000000e+00> : vector<8x128xf32>
    %67 = tpu.matmul %65, %66, %cst_34 {dimension_numbers = #tpu.dot_dimension_numbers<[1], [0], [0], [1], [0, 0, 1, 1], [], []>} : vector<8x128xbf16>, vector<128x128xbf16>, vector<8x128xf32> -> vector<8x128xf32>
    %68 = arith.addf %64, %67 : vector<8x128xf32>
    %c0_35 = arith.constant 0 : index
    %c0_36 = arith.constant 0 : index
    %69 = vector.load %arg13[%c0_35, %c0_36] : memref<1x128xf32, #tpu.memory_space<vmem>>, vector<1x128xf32>
    %70 = vector.broadcast %69 : vector<1x128xf32> to vector<8x128xf32>
    %71 = arith.addf %68, %70 : vector<8x128xf32>
    %72 = math.tanh %71 : vector<8x128xf32>
    %c0_37 = arith.constant 0 : index
    %c0_38 = arith.constant 0 : index
    %73 = vector.load %arg16[%c0_37, %c0_38] : memref<8x128xf32, #tpu.memory_space<vmem>>, vector<8x128xf32>
    tpu.vector_store %arg16[%c0_37, %c0_38], %72 {strides = array<i32>} : memref<8x128xf32, #tpu.memory_space<vmem>>, vector<8x128xf32>,
    return
  }
  func.func @transform_0(%arg0: i32) -> i32 {
    %c0_i32 = arith.constant 0 : i32
    %c0_i32_0 = arith.constant 0 : i32
    return %c0_i32 : i32
  }
  func.func @transform_1(%arg0: i32) -> (i32, i32) {
    %c0_i32 = arith.constant 0 : i32
    %c0_i32_0 = arith.constant 0 : i32
    return %arg0, %c0_i32 : i32, i32
  }
  func.func @transform_2(%arg0: i32) -> (i32, i32) {
    %c0_i32 = arith.constant 0 : i32
    %c0_i32_0 = arith.constant 0 : i32
    %c0_i32_1 = arith.constant 0 : i32
    return %c0_i32, %c0_i32_0 : i32, i32
  }
  func.func @transform_3(%arg0: i32) -> (i32, i32) {
    %c0_i32 = arith.constant 0 : i32
    %c0_i32_0 = arith.constant 0 : i32
    %c0_i32_1 = arith.constant 0 : i32
    return %c0_i32, %c0_i32_0 : i32, i32
  }
  func.func @transform_4(%arg0: i32) -> (i32, i32) {
    %c0_i32 = arith.constant 0 : i32
    %c0_i32_0 = arith.constant 0 : i32
    %c0_i32_1 = arith.constant 0 : i32
    return %c0_i32, %c0_i32_0 : i32, i32
  }
  func.func @transform_5(%arg0: i32) -> (i32, i32) {
    %c0_i32 = arith.constant 0 : i32
    %c0_i32_0 = arith.constant 0 : i32
    %c0_i32_1 = arith.constant 0 : i32
    return %c0_i32, %c0_i32_0 : i32, i32
  }
  func.func @transform_6(%arg0: i32) -> (i32, i32) {
    %c0_i32 = arith.constant 0 : i32
    %c0_i32_0 = arith.constant 0 : i32
    %c0_i32_1 = arith.constant 0 : i32
    return %c0_i32, %c0_i32_0 : i32, i32
  }
  func.func @transform_7(%arg0: i32) -> (i32, i32) {
    %c0_i32 = arith.constant 0 : i32
    %c0_i32_0 = arith.constant 0 : i32
    %c0_i32_1 = arith.constant 0 : i32
    return %c0_i32, %c0_i32_0 : i32, i32
  }
  func.func @transform_8(%arg0: i32) -> (i32, i32) {
    %c0_i32 = arith.constant 0 : i32
    %c0_i32_0 = arith.constant 0 : i32
    %c0_i32_1 = arith.constant 0 : i32
    return %c0_i32, %c0_i32_0 : i32, i32
  }
  func.func @transform_9(%arg0: i32) -> (i32, i32) {
    %c0_i32 = arith.constant 0 : i32
    %c0_i32_0 = arith.constant 0 : i32
    %c0_i32_1 = arith.constant 0 : i32
    return %c0_i32, %c0_i32_0 : i32, i32
  }
  func.func @transform_10(%arg0: i32) -> (i32, i32) {
    %c0_i32 = arith.constant 0 : i32
    %c0_i32_0 = arith.constant 0 : i32
    %c0_i32_1 = arith.constant 0 : i32
    return %c0_i32, %c0_i32_0 : i32, i32
  }
  func.func @transform_11(%arg0: i32) -> (i32, i32) {
    %c0_i32 = arith.constant 0 : i32
    %c0_i32_0 = arith.constant 0 : i32
    %c0_i32_1 = arith.constant 0 : i32
    return %c0_i32, %c0_i32_0 : i32, i32
  }
  func.func @transform_12(%arg0: i32) -> (i32, i32) {
    %c0_i32 = arith.constant 0 : i32
    %c0_i32_0 = arith.constant 0 : i32
    %c0_i32_1 = arith.constant 0 : i32
    return %c0_i32, %c0_i32_0 : i32, i32
  }
  func.func @transform_13(%arg0: i32) -> (i32, i32) {
    %c0_i32 = arith.constant 0 : i32
    %c0_i32_0 = arith.constant 0 : i32
    return %arg0, %c0_i32 : i32, i32
  }
  func.func @transform_14(%arg0: i32) -> (i32, i32) {
    %c0_i32 = arith.constant 0 : i32
    %c0_i32_0 = arith.constant 0 : i32
    return %arg0, %c0_i32 : i32, i32
  }
  func.func @transform_15(%arg0: i32) -> (i32, i32) {
    %c0_i32 = arith.constant 0 : i32
    %c0_i32_0 = arith.constant 0 : i32
    return %arg0, %c0_i32 : i32, i32
  }
}

</mosaic_0001>

<bundles_post_ra>
// kernel: tpu_custom_call.1
= control target key start
LH: loop header
LB: loop body
LE: loop exit
PB: predicated region body
PF: predicated region fallthrough
CT: control target
= control target key end

     0   :  { %s1911_s0 = inlined_call_operand.hbm [shape: f32[2], index: 0, kind: input, shape index: {}]   ;;  %s1912_s1 = inlined_call_operand.hbm [shape: bf16[8,128], index: 1, kind: input, shape index: {}]   ;;  %s1913_s2 = inlined_call_operand.hbm [shape: bf16[128,256], index: 2, kind: input, shape index: {}]   ;;  %s1914_s3 = inlined_call_operand.hbm [shape: f32[1,128], index: 3, kind: input, shape index: {}]   ;;  %s1915_s4 = inlined_call_operand.hbm [shape: bf16[128,256], index: 4, kind: input, shape index: {}]   ;;  %s1916_s5 = inlined_call_operand.hbm [shape: f32[1,256], index: 5, kind: input, shape index: {}]   ;;  %s1917_s6 = inlined_call_operand.hbm [shape: bf16[128,128], index: 6, kind: input, shape index: {}]   ;;  %s1918_s7 = inlined_call_operand.hbm [shape: f32[1,128], index: 7, kind: input, shape index: {}]   ;;  %s1919_s8 = inlined_call_operand.hbm [shape: f32[1,128], index: 8, kind: input, shape index: {}]   ;;  %s1920_s9 = inlined_call_operand.hbm [shape: bf16[128,128], index: 9, kind: input, shape index: {}]   ;;  %s1921_s10 = inlined_call_operand.hbm [shape: f32[1,128], index: 10, kind: input, shape index: {}]   ;;  %s1922_s11 = inlined_call_operand.hbm [shape: bf16[128,128], index: 11, kind: input, shape index: {}]   ;;  %s1923_s12 = inlined_call_operand.hbm [shape: f32[1,128], index: 12, kind: input, shape index: {}]   ;;  %s1924_s13 = inlined_call_operand.hbm [shape: f32[8,128], index: 13, kind: output, shape index: {0}]   ;;  %s1925_s14 = inlined_call_operand.hbm [shape: f32[8,128], index: 14, kind: output, shape index: {1}]   ;;  %s1926_s15 = inlined_call_operand.hbm [shape: f32[8,128], index: 15, kind: output, shape index: {2}]  }
   0x1   :  { %1928 = sst [smem:[#allocation38_spill]] %s1926_s15 }
   0x2   :  { %21 = vsyncpa [#allocation5], 0 }
   0x3   :  { %22 = vsyncpa [#allocation3], 0 }
   0x4   :  { %23 = vsyncpa [#allocation8], 0 }
   0x5   :  { %24 = vsyncpa [#allocation11], 0 }
   0x6   :  { %25 = vsyncpa [#allocation14], 0 }
   0x7   :  { %26 = vsyncpa [#allocation17], 0 }
   0x8   :  { %27 = vsyncpa [#allocation20], 0 }
   0x9   :  { %28 = vsyncpa [#allocation23], 0 }
   0xa   :  { %29 = vsyncpa [#allocation4], 0 }
   0xb   :  { %30 = vsyncpa [#allocation26], 0  ;;  %s1567_s18 = smov [#allocation7]   ;;  %s1207_s22 = scalar_lea.hbm %s1913_s2, 2048 }
   0xc   :  { %s54_s19 = sshll.u32 %s1567_s18, 4  ;;  %p1208_p0 = scmp.ne.s32.totalorder %s1913_s2, %s1207_s22  ;;  %s55_s19 = int_to_ptr.vmem [resolvable:$true] %s54_s19 }
   0xd   :  { %p1211_p1 = scmp.lt.u32.totalorder %s1207_s22, %s1913_s2 }
   0xf   :  { %p1213_p2 = pnand %p1211_p1, %p1208_p0 }
  0x11   :  { %1216 = shalt.err (!%p1213_p2)
}
  0x12   :  { %s1217_s27 = scalar_lea.vmem %s55_s19, 2048  ;;  %p1222_p4 = scmp.lt.s32.totalorder %s55_s19, %s55_s19 }
  0x13   :  { %p1218_p3 = scmp.ne.s32.totalorder %s55_s19, %s1217_s27  ;;  %p1223_p5 = scmp.lt.s32.totalorder %s1217_s27, %s1217_s27 }
  0x15   :  { %p1224_p6 = por %p1223_p5, %p1222_p4 }
  0x17   :  { %p1225_p7 = pnand %p1224_p6, %p1218_p3 }
  0x19   :  { %1228 = shalt.err (!%p1225_p7)
}
  0x1a   :  { %s1568_s28 = smov 128   ;;  %s1569_s29 = smov 8  }
  0x1b   :  { %60 = dma.hbm_to_vmem [thread:$0]  %s1913_s2, 2048, %s55_s19, [#allocation8], %s1568_s28, %s1568_s28, %s1569_s29  }
  0x1c   :  { %s1570_s17 = smov [#allocation10]   ;;  %s1571_s20 = smov [#allocation13]  }
  0x1d   :  { %s76_s18 = sshll.u32 %s1570_s17, 4  ;;  %s98_s21 = sshll.u32 %s1571_s20, 4  ;;  %s77_s18 = int_to_ptr.vmem [resolvable:$true] %s76_s18  ;;  %s99_s21 = int_to_ptr.vmem [resolvable:$true] %s98_s21 }
  0x1e   :  { %s1229_s24 = scalar_lea.hbm %s1915_s4, 2048 }
  0x1f   :  { %p1230_p8 = scmp.ne.s32.totalorder %s1915_s4, %s1229_s24  ;;  %p1233_p9 = scmp.lt.u32.totalorder %s1229_s24, %s1915_s4 }
  0x21   :  { %p1235_p10 = pnand %p1233_p9, %p1230_p8 }
  0x23   :  { %1238 = shalt.err (!%p1235_p10)
}
  0x24   :  { %s1239_s2 = scalar_lea.vmem %s77_s18, 2048  ;;  %p1244_p12 = scmp.lt.s32.totalorder %s77_s18, %s77_s18 }
  0x25   :  { %p1240_p11 = scmp.ne.s32.totalorder %s77_s18, %s1239_s2  ;;  %p1245_p13 = scmp.lt.s32.totalorder %s1239_s2, %s1239_s2 }
  0x27   :  { %p1246_p0 = por %p1245_p13, %p1244_p12 }
  0x29   :  { %p1247_p1 = pnand %p1246_p0, %p1240_p11 }
  0x2b   :  { %1250 = shalt.err (!%p1247_p1)
}
  0x2c   :  { %82 = dma.hbm_to_vmem [thread:$0]  %s1915_s4, 2048, %s77_s18, [#allocation11], %s1568_s28, %s1568_s28, %s1569_s29  }
  0x2d   :  { %s1251_s20 = scalar_lea.hbm %s1917_s6, 1024 }
  0x2e   :  { %p1252_p2 = scmp.ne.s32.totalorder %s1917_s6, %s1251_s20  ;;  %p1255_p3 = scmp.lt.u32.totalorder %s1251_s20, %s1917_s6 }
  0x30   :  { %p1257_p4 = pnand %p1255_p3, %p1252_p2 }
  0x32   :  { %1260 = shalt.err (!%p1257_p4)
}
  0x33   :  { %s1261_s25 = scalar_lea.vmem %s99_s21, 1024  ;;  %p1266_p6 = scmp.lt.s32.totalorder %s99_s21, %s99_s21 }
  0x34   :  { %p1262_p5 = scmp.ne.s32.totalorder %s99_s21, %s1261_s25  ;;  %p1267_p7 = scmp.lt.s32.totalorder %s1261_s25, %s1261_s25 }
  0x36   :  { %p1268_p8 = por %p1267_p7, %p1266_p6 }
  0x38   :  { %p1269_p9 = pnand %p1268_p8, %p1262_p5 }
  0x3a   :  { %1272 = shalt.err (!%p1269_p9)
}
  0x3b   :  { %s1572_s4 = smov 64   ;;  %s1573_s28 = smov 4  }
  0x3c   :  { %104 = dma.hbm_to_vmem [thread:$0]  %s1917_s6, 1024, %s99_s21, [#allocation14], %s1572_s4, %s1572_s4, %s1573_s28  }
  0x3d   :  { %s1574_s26 = smov [#allocation16]   ;;  %s1575_s2 = smov [#allocation19]  }
  0x3e   :  { %s121_s27 = sshll.u32 %s1574_s26, 4  ;;  %s143_s19 = sshll.u32 %s1575_s2, 4  ;;  %s122_s27 = int_to_ptr.vmem [resolvable:$true] %s121_s27  ;;  %s144_s19 = int_to_ptr.vmem [resolvable:$true] %s143_s19 }
  0x3f   :  { %s1273_s17 = scalar_lea.hbm %s1919_s8, 16 }
  0x40   :  { %p1274_p10 = scmp.ne.s32.totalorder %s1919_s8, %s1273_s17  ;;  %p1277_p11 = scmp.lt.u32.totalorder %s1273_s17, %s1919_s8 }
  0x42   :  { %p1279_p12 = pnand %p1277_p11, %p1274_p10 }
  0x44   :  { %1282 = shalt.err (!%p1279_p12)
}
  0x45   :  { %s1283_s6 = scalar_lea.vmem %s122_s27, 16  ;;  %s1287_s21 = scalar_lea.vmem %s122_s27, 32 }
  0x46   :  { %p1284_p13 = scmp.ne.s32.totalorder %s122_s27, %s1283_s6  ;;  %p1288_p0 = scmp.lt.s32.totalorder %s122_s27, %s122_s27 }
  0x47   :  { %p1289_p1 = scmp.lt.s32.totalorder %s1287_s21, %s1283_s6 }
  0x49   :  { %p1290_p2 = por %p1289_p1, %p1288_p0 }
  0x4b   :  { %p1291_p3 = pnand %p1290_p2, %p1284_p13 }
  0x4d   :  { %1294 = shalt.err (!%p1291_p3)
}
  0x4e   :  { %124 = dma.hbm_to_vmem [thread:$0]  %s1919_s8, 16, %s122_s27, [#allocation17]  }
  0x4f   :  { %s1295_s26 = scalar_lea.hbm %s1921_s10, 16 }
  0x50   :  { %p1296_p4 = scmp.ne.s32.totalorder %s1921_s10, %s1295_s26  ;;  %p1299_p5 = scmp.lt.u32.totalorder %s1295_s26, %s1921_s10 }
  0x52   :  { %p1301_p6 = pnand %p1299_p5, %p1296_p4 }
  0x54   :  { %1304 = shalt.err (!%p1301_p6)
}
  0x55   :  { %s1305_s20 = scalar_lea.vmem %s144_s19, 16  ;;  %s1309_s15 = scalar_lea.vmem %s144_s19, 32 }
  0x56   :  { %p1306_p7 = scmp.ne.s32.totalorder %s144_s19, %s1305_s20  ;;  %p1310_p8 = scmp.lt.s32.totalorder %s144_s19, %s144_s19 }
  0x57   :  { %p1311_p9 = scmp.lt.s32.totalorder %s1309_s15, %s1305_s20 }
  0x59   :  { %p1312_p10 = por %p1311_p9, %p1310_p8 }
  0x5b   :  { %p1313_p11 = pnand %p1312_p10, %p1306_p7 }
  0x5d   :  { %1316 = shalt.err (!%p1313_p11)
}
  0x5e   :  { %146 = dma.hbm_to_vmem [thread:$0]  %s1921_s10, 16, %s144_s19, [#allocation20]  }
  0x5f   :  { %s1317_s6 = scalar_lea.hbm %s1911_s0, 16 }
  0x60   :  { %p1318_p12 = scmp.ne.s32.totalorder %s1911_s0, %s1317_s6  ;;  %p1321_p13 = scmp.lt.u32.totalorder %s1317_s6, %s1911_s0 }
  0x62   :  { %p1323_p0 = pnand %p1321_p13, %p1318_p12 }
  0x64   :  { %1326 = shalt.err (!%p1323_p0)
}
  0x65   :  { %s1576_s18 = smov [#allocation2]   ;;  %s1577_s10 = smov [#allocation6]  }
  0x66   :  { %38 = dma.hbm_to_smem %s1911_s0, 16, %s1576_s18, [#allocation5]  }
  0x67   :  { %s45_s19 = sshll.u32 %s1577_s10, 4  ;;  %s1578_s30 = smov [#allocation9]   ;;  %s46_s19 = int_to_ptr.vmem [resolvable:$true] %s45_s19 }
  0x68   :  { %s67_s16 = sshll.u32 %s1578_s30, 4  ;;  %s1327_s15 = scalar_lea.hbm %s1912_s1, 64  ;;  %s68_s16 = int_to_ptr.vmem [resolvable:$true] %s67_s16 }
  0x69   :  { %p1328_p1 = scmp.ne.s32.totalorder %s1912_s1, %s1327_s15  ;;  %p1331_p2 = scmp.lt.u32.totalorder %s1327_s15, %s1912_s1 }
  0x6b   :  { %p1333_p3 = pnand %p1331_p2, %p1328_p1 }
  0x6d   :  { %1336 = shalt.err (!%p1333_p3)
}
  0x6e   :  { %s1337_s0 = scalar_lea.vmem %s46_s19, 64  ;;  %p1342_p5 = scmp.lt.s32.totalorder %s46_s19, %s46_s19 }
  0x6f   :  { %p1338_p4 = scmp.ne.s32.totalorder %s46_s19, %s1337_s0  ;;  %p1343_p6 = scmp.lt.s32.totalorder %s1337_s0, %s1337_s0 }
  0x71   :  { %p1344_p7 = por %p1343_p6, %p1342_p5 }
  0x73   :  { %p1345_p8 = pnand %p1344_p7, %p1338_p4 }
  0x75   :  { %1348 = shalt.err (!%p1345_p8)
}
  0x76   :  { %48 = dma.hbm_to_vmem [thread:$0]  %s1912_s1, 64, %s46_s19, [#allocation3]  }
  0x77   :  { %s1349_s29 = scalar_lea.hbm %s1914_s3, 16 }
  0x78   :  { %p1350_p9 = scmp.ne.s32.totalorder %s1914_s3, %s1349_s29  ;;  %p1353_p10 = scmp.lt.u32.totalorder %s1349_s29, %s1914_s3 }
  0x7a   :  { %p1355_p11 = pnand %p1353_p10, %p1350_p9 }
  0x7c   :  { %1358 = shalt.err (!%p1355_p11)
}
  0x7d   :  { %s1359_s30 = scalar_lea.vmem %s68_s16, 16  ;;  %s1363_s17 = scalar_lea.vmem %s68_s16, 32 }
  0x7e   :  { %p1360_p12 = scmp.ne.s32.totalorder %s68_s16, %s1359_s30  ;;  %p1364_p13 = scmp.lt.s32.totalorder %s68_s16, %s68_s16 }
  0x7f   :  { %p1365_p0 = scmp.lt.s32.totalorder %s1363_s17, %s1359_s30 }
  0x81   :  { %p1366_p1 = por %p1365_p0, %p1364_p13 }
  0x83   :  { %p1367_p2 = pnand %p1366_p1, %p1360_p12 }
  0x85   :  { %1370 = shalt.err (!%p1367_p2)
}
  0x86   :  { %70 = dma.hbm_to_vmem [thread:$0]  %s1914_s3, 16, %s68_s16, [#allocation8]  }
  0x87   :  { %s1579_s20 = smov [#allocation12]   ;;  %s1580_s8 = smov [#allocation15]  }
  0x88   :  { %s89_s15 = sshll.u32 %s1579_s20, 4  ;;  %s111_s27 = sshll.u32 %s1580_s8, 4  ;;  %s90_s15 = int_to_ptr.vmem [resolvable:$true] %s89_s15  ;;  %s112_s27 = int_to_ptr.vmem [resolvable:$true] %s111_s27 }
  0x89   :  { %s1371_s0 = scalar_lea.hbm %s1916_s5, 32 }
  0x8a   :  { %p1372_p3 = scmp.ne.s32.totalorder %s1916_s5, %s1371_s0  ;;  %p1375_p4 = scmp.lt.u32.totalorder %s1371_s0, %s1916_s5 }
  0x8c   :  { %p1377_p5 = pnand %p1375_p4, %p1372_p3 }
  0x8e   :  { %1380 = shalt.err (!%p1377_p5)
}
  0x8f   :  { %s1381_s3 = scalar_lea.vmem %s90_s15, 32  ;;  %p1386_p7 = scmp.lt.s32.totalorder %s90_s15, %s90_s15 }
  0x90   :  { %p1382_p6 = scmp.ne.s32.totalorder %s90_s15, %s1381_s3  ;;  %p1387_p8 = scmp.lt.s32.totalorder %s1381_s3, %s1381_s3 }
  0x92   :  { %p1388_p9 = por %p1387_p8, %p1386_p7 }
  0x94   :  { %p1389_p10 = pnand %p1388_p9, %p1382_p6 }
  0x96   :  { %1392 = shalt.err (!%p1389_p10)
}
  0x97   :  { %92 = dma.hbm_to_vmem [thread:$0]  %s1916_s5, 32, %s90_s15, [#allocation11]  }
  0x98   :  { %s1393_s2 = scalar_lea.hbm %s1918_s7, 16 }
  0x99   :  { %p1394_p11 = scmp.ne.s32.totalorder %s1918_s7, %s1393_s2  ;;  %p1397_p12 = scmp.lt.u32.totalorder %s1393_s2, %s1918_s7 }
  0x9b   :  { %p1399_p13 = pnand %p1397_p12, %p1394_p11 }
  0x9d   :  { %1402 = shalt.err (!%p1399_p13)
}
  0x9e   :  { %s1403_s19 = scalar_lea.vmem %s112_s27, 16  ;;  %s1407_s20 = scalar_lea.vmem %s112_s27, 32 }
  0x9f   :  { %p1404_p0 = scmp.ne.s32.totalorder %s112_s27, %s1403_s19  ;;  %p1408_p1 = scmp.lt.s32.totalorder %s112_s27, %s112_s27 }
  0xa0   :  { %p1409_p2 = scmp.lt.s32.totalorder %s1407_s20, %s1403_s19 }
  0xa2   :  { %p1410_p3 = por %p1409_p2, %p1408_p1 }
  0xa4   :  { %p1411_p4 = pnand %p1410_p3, %p1404_p0 }
  0xa6   :  { %1414 = shalt.err (!%p1411_p4)
}
  0xa7   :  { %114 = dma.hbm_to_vmem [thread:$0]  %s1918_s7, 16, %s112_s27, [#allocation14]  }
  0xa8   :  { %s1581_s8 = smov [#allocation18]   ;;  %s1582_s23 = smov [#allocation21]  }
  0xa9   :  { %s130_s22 = sshll.u32 %s1581_s8, 4  ;;  %s152_s0 = sshll.u32 %s1582_s23, 4  ;;  %s131_s22 = int_to_ptr.vmem [resolvable:$true] %s130_s22  ;;  %s1793_s0 = int_to_ptr.vmem [resolvable:$true] %s152_s0 }
  0xaa   :  { %s1415_s24 = scalar_lea.hbm %s1920_s9, 1024 }
  0xab   :  { %p1416_p5 = scmp.ne.s32.totalorder %s1920_s9, %s1415_s24  ;;  %p1419_p6 = scmp.lt.u32.totalorder %s1415_s24, %s1920_s9 }
  0xad   :  { %p1421_p7 = pnand %p1419_p6, %p1416_p5 }
  0xaf   :  { %1424 = shalt.err (!%p1421_p7)
}
  0xb0   :  { %s1425_s7 = scalar_lea.vmem %s131_s22, 1024  ;;  %p1430_p9 = scmp.lt.s32.totalorder %s131_s22, %s131_s22 }
  0xb1   :  { %p1426_p8 = scmp.ne.s32.totalorder %s131_s22, %s1425_s7  ;;  %p1431_p10 = scmp.lt.s32.totalorder %s1425_s7, %s1425_s7 }
  0xb3   :  { %p1432_p11 = por %p1431_p10, %p1430_p9 }
  0xb5   :  { %p1433_p12 = pnand %p1432_p11, %p1426_p8 }
  0xb7   :  { %1436 = shalt.err (!%p1433_p12)
}
  0xb8   :  { %136 = dma.hbm_to_vmem [thread:$0]  %s1920_s9, 1024, %s131_s22, [#allocation17], %s1572_s4, %s1572_s4, %s1573_s28  }
  0xb9   :  { %s1437_s10 = scalar_lea.hbm %s1922_s11, 1024 }
  0xba   :  { %p1438_p13 = scmp.ne.s32.totalorder %s1922_s11, %s1437_s10  ;;  %p1441_p0 = scmp.lt.u32.totalorder %s1437_s10, %s1922_s11 }
  0xbc   :  { %p1443_p1 = pnand %p1441_p0, %p1438_p13 }
  0xbe   :  { %1446 = shalt.err (!%p1443_p1)
}
  0xbf   :  { %s1447_s20 = scalar_lea.vmem %s1793_s0, 1024  ;;  %p1452_p3 = scmp.lt.s32.totalorder %s1793_s0, %s1793_s0 }
  0xc0   :  { %p1448_p2 = scmp.ne.s32.totalorder %s1793_s0, %s1447_s20  ;;  %p1453_p4 = scmp.lt.s32.totalorder %s1447_s20, %s1447_s20 }
  0xc2   :  { %p1454_p5 = por %p1453_p4, %p1452_p3 }
  0xc4   :  { %p1455_p6 = pnand %p1454_p5, %p1448_p2 }
  0xc6   :  { %1458 = shalt.err (!%p1455_p6)
}
  0xc7   :  { %158 = dma.hbm_to_vmem [thread:$0]  %s1922_s11, 1024, %s1793_s0, [#allocation20], %s1572_s4, %s1572_s4, %s1573_s28  }
  0xc8   :  { %s1583_s15 = smov [#allocation22]   ;;  %s1459_s6 = scalar_lea.hbm %s1923_s12, 16 }
  0xc9   :  { %s165_s8 = sshll.u32 %s1583_s15, 4  ;;  %p1460_p7 = scmp.ne.s32.totalorder %s1923_s12, %s1459_s6  ;;  %s166_s8 = int_to_ptr.vmem [resolvable:$true] %s165_s8 }
  0xca   :  { %p1463_p8 = scmp.lt.u32.totalorder %s1459_s6, %s1923_s12 }
  0xcc   :  { %p1465_p9 = pnand %p1463_p8, %p1460_p7 }
  0xce   :  { %1468 = shalt.err (!%p1465_p9)
}
  0xcf   :  { %s1469_s16 = scalar_lea.vmem %s166_s8, 16  ;;  %s1473_s11 = scalar_lea.vmem %s166_s8, 32 }
  0xd0   :  { %p1470_p10 = scmp.ne.s32.totalorder %s166_s8, %s1469_s16  ;;  %p1474_p11 = scmp.lt.s32.totalorder %s166_s8, %s166_s8 }
  0xd1   :  { %p1475_p12 = scmp.lt.s32.totalorder %s1473_s11, %s1469_s16 }
  0xd3   :  { %p1476_p13 = por %p1475_p12, %p1474_p11 }
  0xd5   :  { %p1477_p0 = pnand %p1476_p13, %p1470_p10 }
  0xd7   :  { %1480 = shalt.err (!%p1477_p0)
}
  0xd8   :  { %168 = dma.hbm_to_vmem [thread:$0]  %s1923_s12, 16, %s166_s8, [#allocation23]  }
  0xd9   :  { %1547 = dma.done.wait [#allocation5], 16  }
  0xda   :  { %1548 = vsyncadd [#allocation5], 4294967280 }
  0xdb   :  { %1549 = dma.done.wait [#allocation3], 64  }
  0xdc   :  { %1550 = vsyncadd [#allocation3], 4294967232 }
  0xdd   :  { %1551 = dma.done.wait [#allocation8], 2064  }
  0xde   :  { %1552 = vsyncadd [#allocation8], 4294965232 }
  0xdf   :  { %1553 = dma.done.wait [#allocation11], 2080  }
  0xe0   :  { %1554 = vsyncadd [#allocation11], 4294965216 }
  0xe1   :  { %1555 = dma.done.wait [#allocation14], 1040  }
  0xe2   :  { %1556 = vsyncadd [#allocation14], 4294966256 }
  0xe3   :  { %1557 = dma.done.wait [#allocation17], 1040  }
  0xe4   :  { %1558 = vsyncadd [#allocation17], 4294966256 }
  0xe5   :  { %1559 = dma.done.wait [#allocation20], 1040  }
  0xe6   :  { %1560 = vsyncadd [#allocation20], 4294966256 }
  0xe7   :  { %1561 = dma.done.wait [#allocation23], 16  }
  0xe8   :  { %1562 = vsyncadd [#allocation23], 4294967280 }
  0xe9   :  { %208 = sfence }
  0xea   :  { %v1117_v0 = vld [vmem:[#allocation7 + $0x4] ss:$8 sps:$4 sm:$0xff]   ;;  %v1119_v1 = vld [vmem:[#allocation7] ss:$8 sps:$4 sm:$0xff]   ;;  %v1584_v2 = vmov 0   ;;  %v1585_v34 = vmov 0.0   ;;  %v381_v62 = vlaneseq }
  0xeb   :  { %339 = vmatprep.mubr.bf16.mxu0 %v1584_v2  ;;  %503 = vmatprep.mubr.bf16.mxu1 %v1584_v2  ;;  %v1120_v3 = vld [vmem:[#allocation7 + $0x14] ss:$8 sps:$4 sm:$0xff]   ;;  %v1122_v4 = vld [vmem:[#allocation7 + $0x10] ss:$8 sps:$4 sm:$0xff]   ;;  %v1123_v5 = vld [vmem:[#allocation7 + $0x24] ss:$8 sps:$4 sm:$0xff]  }
  0xec   :  { %307 = vmatprep.subr.bf16.mxu0 %v1117_v0  ;;  %v1125_v6 = vld [vmem:[#allocation7 + $0x20] ss:$8 sps:$4 sm:$0xff]   ;;  %v1126_v7 = vld [vmem:[#allocation7 + $0x34] ss:$8 sps:$4 sm:$0xff]   ;;  %v1128_v8 = vld [vmem:[#allocation7 + $0x30] ss:$8 sps:$4 sm:$0xff]  }
  0xed   :  { %308 = vmatpush1.bf16.msra.mxu0 %v1119_v1  ;;  %v1129_v9 = vld [vmem:[#allocation7 + $0x44] ss:$8 sps:$4 sm:$0xff]   ;;  %v1131_v11 = vld [vmem:[#allocation7 + $0x40] ss:$8 sps:$4 sm:$0xff]   ;;  %v1132_v12 = vld [vmem:[#allocation7 + $0x54] ss:$8 sps:$4 sm:$0xff]  }
  0xee   :  { %309 = vmatprep.subr.bf16.mxu0 %v1120_v3  ;;  %v1141_v10 = vld [vmem:[#allocation10 + $0x4] ss:$8 sps:$4 sm:$0xff]   ;;  %v1138_v16 = vld [vmem:[#allocation7 + $0x74] ss:$8 sps:$4 sm:$0xff]   ;;  %v1143_v19 = vld [vmem:[#allocation10] ss:$8 sps:$4 sm:$0xff]  }
  0xef   :  { %471 = vmatprep.subr.bf16.mxu1 %v1141_v10  ;;  %v1134_v13 = vld [vmem:[#allocation7 + $0x50] ss:$8 sps:$4 sm:$0xff]   ;;  %v1135_v14 = vld [vmem:[#allocation7 + $0x64] ss:$8 sps:$4 sm:$0xff]   ;;  %v1137_v15 = vld [vmem:[#allocation7 + $0x60] ss:$8 sps:$4 sm:$0xff]  }
  0xf0   :  { %v1140_v17 = vld [vmem:[#allocation7 + $0x70] ss:$8 sps:$4 sm:$0xff]   ;;  %v210_v18 = vld [vmem:[#allocation6] sm:$0xf]  ;;  %472 = vmatpush1.bf16.msra.mxu1 %v1143_v19  ;;  %v1149_v23 = vld [vmem:[#allocation10 + $0x20] ss:$8 sps:$4 sm:$0xff]  }
  0xf1   :  { %310 = vmatpush1.bf16.msra.mxu0 %v1122_v4  ;;  %v1144_v20 = vld [vmem:[#allocation10 + $0x14] ss:$8 sps:$4 sm:$0xff]   ;;  %v1146_v21 = vld [vmem:[#allocation10 + $0x10] ss:$8 sps:$4 sm:$0xff]   ;;  %v1147_v22 = vld [vmem:[#allocation10 + $0x24] ss:$8 sps:$4 sm:$0xff]  }
  0xf2   :  { %311 = vmatprep.subr.bf16.mxu0 %v1123_v5  ;;  %473 = vmatprep.subr.bf16.mxu1 %v1144_v20  ;;  %v1150_v24 = vld [vmem:[#allocation10 + $0x34] ss:$8 sps:$4 sm:$0xff]   ;;  %v1152_v25 = vld [vmem:[#allocation10 + $0x30] ss:$8 sps:$4 sm:$0xff]   ;;  %v1153_v26 = vld [vmem:[#allocation10 + $0x44] ss:$8 sps:$4 sm:$0xff]  }
  0xf3   :  { %v1155_v27 = vld [vmem:[#allocation10 + $0x40] ss:$8 sps:$4 sm:$0xff]   ;;  %v1156_v28 = vld [vmem:[#allocation10 + $0x54] ss:$8 sps:$4 sm:$0xff]   ;;  %v1158_v29 = vld [vmem:[#allocation10 + $0x50] ss:$8 sps:$4 sm:$0xff]  }
  0xf4   :  { %474 = vmatpush1.bf16.msra.mxu1 %v1146_v21  ;;  %v1159_v30 = vld [vmem:[#allocation10 + $0x64] ss:$8 sps:$4 sm:$0xff]   ;;  %v1161_v31 = vld [vmem:[#allocation10 + $0x60] ss:$8 sps:$4 sm:$0xff]   ;;  %v1162_v32 = vld [vmem:[#allocation10 + $0x74] ss:$8 sps:$4 sm:$0xff]  }
  0xf5   :  { %312 = vmatpush1.bf16.msra.mxu0 %v1125_v6  ;;  %475 = vmatprep.subr.bf16.mxu1 %v1147_v22  ;;  %v1164_v33 = vld [vmem:[#allocation10 + $0x70] ss:$8 sps:$4 sm:$0xff]   ;;  %v958_v35 = vld [vmem:[#allocation9] ss:$0 sm:$0xff]  ;;  %v1165_v46 = vld [vmem:[#allocation13] sm:$0xff]   ;;  %vm1586_vm0 = vmmov 0  }
  0xf6   :  { %313 = vmatprep.subr.bf16.mxu0 %v1126_v7  ;;  %v1166_v47 = vld [vmem:[#allocation18] sm:$0xff]   ;;  %v1168_v49 = vld [vmem:[#allocation18 + $0x8] sm:$0xff]   ;;  %v1170_v51 = vld [vmem:[#allocation18 + $0x10] sm:$0xff]   ;;  %v382_v63 = vshrl.u32 %v381_v62, 7  ;;  %s646_s12 = sld [smem:[#allocation2]]  ;;  %s1587_s0 = smov [#allocation24]  }
  0xf7   :  { %v1167_v48 = vld [vmem:[#allocation13 + $0x8] sm:$0xff]   ;;  %v1169_v50 = vld [vmem:[#allocation13 + $0x10] sm:$0xff]   ;;  %v1171_v52 = vld [vmem:[#allocation13 + $0x18] sm:$0xff]   ;;  %s899_s29 = sshll.u32 %s1587_s0, 4  ;;  %s900_s29 = int_to_ptr.vmem [resolvable:$true] %s899_s29 }
  0xf8   :  { %476 = vmatpush1.bf16.msra.mxu1 %v1149_v23  ;;  %v1172_v53 = vld [vmem:[#allocation18 + $0x18] sm:$0xff]   ;;  %v1174_v55 = vld [vmem:[#allocation18 + $0x20] sm:$0xff]   ;;  %v1176_v57 = vld [vmem:[#allocation18 + $0x28] sm:$0xff]   ;;  %v383_v0 = vsub.s32 0, %v382_v63  ;;  %v387_v2 = vsub.s32 1, %v382_v63  ;;  %s1481_s7 = scalar_lea.vmem %s900_s29, 128  ;;  %p1486_p2 = scmp.lt.s32.totalorder %s900_s29, %s900_s29 }
  0xf9   :  { %314 = vmatpush1.bf16.msra.mxu0 %v1128_v8  ;;  %477 = vmatprep.subr.bf16.mxu1 %v1150_v24  ;;  %v1173_v54 = vld [vmem:[#allocation13 + $0x20] sm:$0xff]   ;;  %v1175_v56 = vld [vmem:[#allocation13 + $0x28] sm:$0xff]   ;;  %v1177_v58 = vld [vmem:[#allocation13 + $0x30] sm:$0xff]   ;;  %p1482_p1 = scmp.ne.s32.totalorder %s900_s29, %s1481_s7  ;;  %p1487_p3 = scmp.lt.s32.totalorder %s1481_s7, %s1481_s7 }
  0xfa   :  { %315 = vmatprep.subr.bf16.mxu0 %v1129_v9  ;;  %v1178_v59 = vld [vmem:[#allocation18 + $0x30] sm:$0xff]   ;;  %v1180_v61 = vld [vmem:[#allocation18 + $0x38] sm:$0xff]  }
  0xfb   :  { %v1179_v60 = vld [vmem:[#allocation13 + $0x38] sm:$0xff]   ;;  %v1182_v22 = vld [vmem:[#allocation21 + $0x8] sm:$0xff]   ;;  %p1488_p4 = por %p1487_p3, %p1486_p2 }
  0xfc   :  { %478 = vmatpush1.bf16.msra.mxu1 %v1152_v25  ;;  %v379_v1 = vld [vmem:[#allocation12] sm:$0x3]  ;;  %v1183_v23 = vld [vmem:[#allocation21 + $0x10] sm:$0xff]   ;;  %v1185_v25 = vld [vmem:[#allocation21 + $0x20] sm:$0xff]  }
  0xfd   :  { %316 = vmatpush1.bf16.msra.mxu0 %v1131_v11  ;;  %479 = vmatprep.subr.bf16.mxu1 %v1153_v26  ;;  %v384_v3 = vrot.slane %v379_v1, %v383_v0  ;;  %v388_v4 = vrot.slane %v379_v1, %v387_v2  ;;  %v1184_v24 = vld [vmem:[#allocation21 + $0x18] sm:$0xff]   ;;  %v1186_v26 = vld [vmem:[#allocation21 + $0x28] sm:$0xff]   ;;  %p1489_p5 = pnand %p1488_p4, %p1482_p1 }
  0xfe   :  { %317 = vmatprep.subr.bf16.mxu0 %v1132_v12 }
 0x100   :  { %480 = vmatpush1.bf16.msra.mxu1 %v1155_v27  ;;  %v1187_v27 = vld [vmem:[#allocation21 + $0x30] sm:$0xff]  }
 0x101   :  { %318 = vmatpush1.bf16.msra.mxu0 %v1134_v13  ;;  %481 = vmatprep.subr.bf16.mxu1 %v1156_v28  ;;  %v1188_v28 = vld [vmem:[#allocation21 + $0x38] sm:$0xff]  }
 0x102   :  { %319 = vmatprep.subr.bf16.mxu0 %v1135_v14 }
 0x104   :  { %482 = vmatpush1.bf16.msra.mxu1 %v1158_v29  ;;  %v978_v29 = vld [vmem:[#allocation15] ss:$0 sm:$0xff] }
 0x105   :  { %320 = vmatpush1.bf16.msra.mxu0 %v1137_v15  ;;  %483 = vmatprep.subr.bf16.mxu1 %v1159_v30  ;;  %v988_v30 = vld [vmem:[#allocation19] ss:$0 sm:$0xff] }
 0x106   :  { %321 = vmatprep.subr.bf16.mxu0 %v1138_v16 }
 0x108   :  { %484 = vmatpush1.bf16.msra.mxu1 %v1161_v31 }
 0x109   :  { %322 = vmatpush1.bf16.msra.mxu0 %v1140_v17  ;;  %485 = vmatprep.subr.bf16.mxu1 %v1162_v32 }
 0x10a   :  { %1034 = vmatprep.subr.bf16.mxu0 %v1585_v34 }
 0x10c   :  { %340 = vmatmul.mubr.bf16.vlgmr.msra.gmra.mrb[0].mxu0 %v210_v18  ;;  %486 = vmatpush1.bf16.msra.mxu1 %v1164_v33  ;;  %v1181_v18 = vld [vmem:[#allocation21] sm:$0xff]  }
 0x10d   :  { %1054 = vmatprep.subr.bf16.mxu1 %v1585_v34  ;;  %1035 = vmatpush3.bf16.msra.mxu0 %v1165_v46 }
 0x10e   :  { %1036 = vmatprep.subr.bf16.mxu0 %v1585_v34  ;;  %1050 = vmatprep.mubr.msk.bf16.mxu0 %vm1586_vm0, %v1585_v34 }
 0x111   :  { %1037 = vmatpush3.bf16.msra.mxu0 %v1167_v48 }
 0x112   :  { %1038 = vmatprep.subr.bf16.mxu0 %v1585_v34 }
 0x115   :  { %1039 = vmatpush3.bf16.msra.mxu0 %v1169_v50 }
 0x116   :  { %1040 = vmatprep.subr.bf16.mxu0 %v1585_v34 }
 0x119   :  { %1041 = vmatpush3.bf16.msra.mxu0 %v1171_v52 }
 0x11a   :  { %1042 = vmatprep.subr.bf16.mxu0 %v1585_v34 }
 0x11d   :  { %1043 = vmatpush3.bf16.msra.mxu0 %v1173_v54 }
 0x11e   :  { %1044 = vmatprep.subr.bf16.mxu0 %v1585_v34 }
 0x121   :  { %1045 = vmatpush3.bf16.msra.mxu0 %v1175_v56 }
 0x122   :  { %1046 = vmatprep.subr.bf16.mxu0 %v1585_v34 }
 0x125   :  { %1047 = vmatpush3.bf16.msra.mxu0 %v1177_v58 }
 0x126   :  { %1048 = vmatprep.subr.bf16.mxu0 %v1585_v34 }
 0x129   :  { %1049 = vmatpush3.bf16.msra.mxu0 %v1179_v60 }
 0x12a   :  { %1074 = vmatprep.subr.bf16.mxu0 %v1585_v34 }
 0x1df   :  { %v341_v36 = vpop.f32.mrb[0].mxu0 }
 0x1e0   :  { %v355_v37 = vadd.f32 %v958_v35, %v341_v36  ;;  %v1844_v38 = vpop.f32.mrb[1].mxu0 }
 0x1e1   :  { %v345_v39 = vpop.f32.mrb[2].mxu0 }
 0x1e2   :  { %v959_v40 = vmul.f32 -1.442695, %v355_v37  ;;  %v346_v41 = vpop.f32.mrb[3].mxu0 }
 0x1e4   :  { %1189 = vpow2.f32 %v959_v40 }
 0x1ee   :  { %v1190_v42 = vpop.eup %1189 }
 0x1ef   :  { %v359_v43 = vadd.f32 1.0, %v1190_v42  ;;  %v987_v42 = vld [vmem:[#allocation16] ss:$0 sm:$0xff] }
 0x1f1   :  { %1191 = vrcp.f32 %v359_v43 }
 0x1fb   :  { %v1192_v44 = vpop.eup %1191 }
 0x1fc   :  { %v362_v45 = vpack.c.bf16 %v1192_v44, %v1192_v44 }
 0x1fe   :  { %504 = vmatmul.mubr.bf16.vlgmr.msra.gmra.mrb[0].mxu1 %v362_v45 }
 0x1ff   :  { %1055 = vmatpush3.bf16.msra.mxu1 %v1166_v47  ;;  %1070 = vmatprep.mubr.msk.bf16.mxu1 %vm1586_vm0, %v1585_v34  ;;  %v647_v47 = vstv %s646_s12 }
 0x200   :  { %1056 = vmatprep.subr.bf16.mxu1 %v1585_v34 }
 0x203   :  { %1057 = vmatpush3.bf16.msra.mxu1 %v1168_v49 }
 0x204   :  { %1058 = vmatprep.subr.bf16.mxu1 %v1585_v34 }
 0x207   :  { %1059 = vmatpush3.bf16.msra.mxu1 %v1170_v51 }
 0x208   :  { %1060 = vmatprep.subr.bf16.mxu1 %v1585_v34 }
 0x20b   :  { %1061 = vmatpush3.bf16.msra.mxu1 %v1172_v53 }
 0x20c   :  { %1062 = vmatprep.subr.bf16.mxu1 %v1585_v34 }
 0x20f   :  { %1063 = vmatpush3.bf16.msra.mxu1 %v1174_v55 }
 0x210   :  { %1064 = vmatprep.subr.bf16.mxu1 %v1585_v34 }
 0x213   :  { %1065 = vmatpush3.bf16.msra.mxu1 %v1176_v57 }
 0x214   :  { %1066 = vmatprep.subr.bf16.mxu1 %v1585_v34 }
 0x217   :  { %1067 = vmatpush3.bf16.msra.mxu1 %v1178_v59 }
 0x218   :  { %1068 = vmatprep.subr.bf16.mxu1 %v1585_v34 }
 0x21b   :  { %1069 = vmatpush3.bf16.msra.mxu1 %v1180_v61 }
 0x2d1   :  { %v505_v5 = vpop.f32.mrb[0].mxu1 }
 0x2d2   :  { %v506_v6 = vadd.f32 %v505_v5, %v384_v3  ;;  %v507_v7 = vpop.f32.mrb[1].mxu1 }
 0x2d3   :  { %v508_v8 = vadd.f32 %v507_v7, %v388_v4  ;;  %v509_v9 = vpop.f32.mrb[2].mxu1 }
 0x2d4   :  { %v976_v10 = vmul.f32 -1.442695, %v506_v6  ;;  %v510_v11 = vpop.f32.mrb[3].mxu1 }
 0x2d5   :  { %v977_v12 = vmul.f32 -1.442695, %v508_v8 }
 0x2d6   :  { %1193 = vpow2.f32 %v976_v10 }
 0x2d7   :  { %1195 = vpow2.f32 %v977_v12 }
 0x2e0   :  { %v1194_v13 = vpop.eup %1193 }
 0x2e1   :  { %v1196_v14 = vpop.eup %1195  ;;  %v518_v15 = vadd.f32 1.0, %v1194_v13 }
 0x2e2   :  { %v519_v16 = vadd.f32 1.0, %v1196_v14 }
 0x2e3   :  { %1197 = vrcp.f32 %v518_v15 }
 0x2e4   :  { %1199 = vrcp.f32 %v519_v16 }
 0x2ed   :  { %v1198_v17 = vpop.eup %1197 }
 0x2ee   :  { %v1200_v19 = vpop.eup %1199  ;;  %v524_v20 = vpack.c.bf16 %v1198_v17, %v1198_v17 }
 0x2ef   :  { %v650_v21 = vpack.c.bf16 %v1200_v19, %v1200_v19 }
 0x2f0   :  { %1051 = vmatmul.mubr.bf16.vlgmr.msra.gmra.mrb[4].mxu0 %v524_v20 }
 0x2f1   :  { %1071 = vmatmul.mubr.bf16.vlgmr.msra.gmra.mrb[4].mxu1 %v650_v21  ;;  %1075 = vmatpush3.bf16.msra.mxu0 %v1181_v18 }
 0x2f2   :  { %1076 = vmatprep.subr.bf16.mxu0 %v1585_v34  ;;  %1090 = vmatprep.mubr.msk.bf16.mxu0 %vm1586_vm0, %v1585_v34 }
 0x2f5   :  { %1077 = vmatpush3.bf16.msra.mxu0 %v1182_v22 }
 0x2f6   :  { %1078 = vmatprep.subr.bf16.mxu0 %v1585_v34 }
 0x2f9   :  { %1079 = vmatpush3.bf16.msra.mxu0 %v1183_v23 }
 0x2fa   :  { %1080 = vmatprep.subr.bf16.mxu0 %v1585_v34 }
 0x2fd   :  { %1081 = vmatpush3.bf16.msra.mxu0 %v1184_v24 }
 0x2fe   :  { %1082 = vmatprep.subr.bf16.mxu0 %v1585_v34 }
 0x301   :  { %1083 = vmatpush3.bf16.msra.mxu0 %v1185_v25 }
 0x302   :  { %1084 = vmatprep.subr.bf16.mxu0 %v1585_v34 }
 0x305   :  { %1085 = vmatpush3.bf16.msra.mxu0 %v1186_v26 }
 0x306   :  { %1086 = vmatprep.subr.bf16.mxu0 %v1585_v34 }
 0x309   :  { %1087 = vmatpush3.bf16.msra.mxu0 %v1187_v27 }
 0x30a   :  { %1088 = vmatprep.subr.bf16.mxu0 %v1585_v34 }
 0x30d   :  { %1089 = vmatpush3.bf16.msra.mxu0 %v1188_v28 }
 0x3c3   :  { %v630_v31 = vpop.f32.mrb[4].mxu0 }
 0x3c4   :  { %v1052_v32 = vpop.f32.mrb[5].mxu0  ;;  %v756_v33 = vpop.f32.mrb[4].mxu1  ;;  %v631_v35 = vadd.f32 %v978_v29, %v630_v31 }
 0x3c5   :  { %v757_v36 = vadd.f32 %v988_v30, %v756_v33  ;;  %v633_v37 = vpop.f32.mrb[6].mxu0  ;;  %v1072_v39 = vpop.f32.mrb[5].mxu1 }
 0x3c6   :  { %v1053_v40 = vpop.f32.mrb[7].mxu0  ;;  %v759_v41 = vpop.f32.mrb[6].mxu1  ;;  %v643_v45 = vmul.f32 %v987_v42, %v631_v35 }
 0x3c7   :  { %v777_v43 = vpack.c.bf16 %v757_v36, %v757_v36  ;;  %762 = vmax.xlane.f32.xlu0 %v757_v36  ;;  %v1073_v44 = vpop.f32.mrb[7].mxu1 }
 0x3c9   :  { %1091 = vmatmul.mubr.bf16.vlgmr.msra.gmra.mrb[8].mxu0 %v777_v43 }
 0x3cb   :  { %644 = vadd.xlane.f32.xlu0 %v643_v45 }
 0x454   :  { %v763_v34 = vpop.xlane.xlu0 %762 }
 0x455   :  { %v764_v46 = vsub.f32 %v757_v36, %v763_v34 }
 0x457   :  { %v765_v48 = vmul.f32 1.442695, %v764_v46 }
 0x458   :  { %v645_v49 = vpop.xlane.xlu0 %644 }
 0x459   :  { %v648_v50 = vadd.f32 %v647_v47, %v645_v49  ;;  %1201 = vpow2.f32 %v765_v48 }
 0x45b   :  { %649 = vst [vmem:[#allocation24] sm:$0xff] %v648_v50 }
 0x463   :  { %v1202_v51 = vpop.eup %1201 }
 0x464   :  { %767 = vadd.xlane.f32.xlu1 %v1202_v51 }
 0x465   :  { %1492 = shalt.err (!%p1489_p5)
}
 0x466   :  { %s1493_s26 = scalar_lea.hbm %s1924_s13, 128 }
 0x467   :  { %p1494_p6 = scmp.ne.s32.totalorder %s1924_s13, %s1493_s26  ;;  %p1497_p7 = scmp.lt.u32.totalorder %s1493_s26, %s1924_s13 }
 0x469   :  { %p1499_p8 = pnand %p1497_p7, %p1494_p6 }
 0x46b   :  { %1502 = shalt.err (!%p1499_p8)
}
 0x46c   :  { %902 = dma.vmem_to_hbm [thread:$0]  %s900_s29, 128, %s1924_s13, [#allocation4]   ;;  %v1006_v56 = vld [vmem:[#allocation22] ss:$0 sm:$0xff] }
 0x46d   :  { %s997_s20 = sld [smem:[#allocation2 + $0x1]]  ;;  %s1588_s9 = smov [#allocation25]  }
 0x46e   :  { %s909_s13 = sshll.u32 %s1588_s9, 4  ;;  %s1589_s5 = smov [#allocation27]   ;;  %s910_s13 = int_to_ptr.vmem [resolvable:$true] %s909_s13 }
 0x46f   :  { %s919_s15 = sshll.u32 %s1589_s5, 4  ;;  %s1503_s8 = scalar_lea.vmem %s910_s13, 128  ;;  %s920_s15 = int_to_ptr.vmem [resolvable:$true] %s919_s15 }
 0x470   :  { %p1504_p9 = scmp.ne.s32.totalorder %s910_s13, %s1503_s8  ;;  %p1508_p10 = scmp.lt.s32.totalorder %s910_s13, %s910_s13 }
 0x471   :  { %p1509_p11 = scmp.lt.s32.totalorder %s1503_s8, %s1503_s8 }
 0x473   :  { %v774_v52 = vstv %s997_s20  ;;  %p1510_p12 = por %p1509_p11, %p1508_p10 }
 0x474   :  { %v775_v53 = vmul.f32 %v774_v52, %v648_v50 }
 0x475   :  { %p1511_p13 = pnand %p1510_p12, %p1504_p9 }
 0x476   :  { %v776_v54 = vadd.f32 %v775_v53, %v1844_v38 }
 0x49c   :  { %v876_v55 = vpop.f32.mrb[8].mxu0 }
 0x49d   :  { %v882_v57 = vadd.f32 %v876_v55, %v776_v54  ;;  %v1092_v58 = vpop.f32.mrb[9].mxu0 }
 0x49e   :  { %v879_v59 = vpop.f32.mrb[10].mxu0 }
 0x49f   :  { %v890_v60 = vadd.f32 %v1006_v56, %v882_v57  ;;  %v1093_v61 = vpop.f32.mrb[11].mxu0 }
 0x4a1   :  { %1203 = vtanh.f32 %v890_v60 }
 0x4ab   :  { %v1204_v62 = vpop.eup %1203 }
 0x4ac   :  { %892 = vst [vmem:[#allocation27] sm:$0xff] %v1204_v62 }
 0x4f1   :  { %v768_v63 = vpop.xlane.xlu1 %767 }
 0x4f2   :  { %1205 = vlog2.f32 %v768_v63 }
 0x4fc   :  { %v1206_v0 = vpop.eup %1205 }
 0x4fd   :  { %v770_v1 = vmul.f32 0.6931472, %v1206_v0 }
 0x4ff   :  { %v771_v2 = vsub.f32 %v764_v46, %v770_v1 }
 0x501   :  { %772 = vst [vmem:[#allocation25] sm:$0xff] %v771_v2 }
 0x502   :  { %1514 = shalt.err (!%p1511_p13)
}
 0x503   :  { %s1515_s6 = scalar_lea.hbm %s1925_s14, 128 }
 0x504   :  { %p1516_p0 = scmp.ne.s32.totalorder %s1925_s14, %s1515_s6  ;;  %p1519_p1 = scmp.lt.u32.totalorder %s1515_s6, %s1925_s14 }
 0x506   :  { %p1521_p2 = pnand %p1519_p1, %p1516_p0 }
 0x508   :  { %1524 = shalt.err (!%p1521_p2)
}
 0x509   :  { %912 = dma.vmem_to_hbm [thread:$0]  %s910_s13, 128, %s1925_s14, [#allocation26]  }
 0x50a   :  { %s1525_s4 = scalar_lea.vmem %s920_s15, 128  ;;  %p1530_p4 = scmp.lt.s32.totalorder %s920_s15, %s920_s15 }
 0x50b   :  { %p1526_p3 = scmp.ne.s32.totalorder %s920_s15, %s1525_s4  ;;  %p1531_p5 = scmp.lt.s32.totalorder %s1525_s4, %s1525_s4 }
 0x50d   :  { %p1532_p6 = por %p1531_p5, %p1530_p4 }
 0x50f   :  { %p1533_p7 = pnand %p1532_p6, %p1526_p3 }
 0x511   :  { %1536 = shalt.err (!%p1533_p7)
}
 0x512   :  { %s1929_s0 = sld [smem:[#allocation38_spill]] }
 0x518   :  { %s1537_s29 = scalar_lea.hbm %s1929_s0, 128 }
 0x519   :  { %p1538_p8 = scmp.ne.s32.totalorder %s1929_s0, %s1537_s29  ;;  %p1541_p9 = scmp.lt.u32.totalorder %s1537_s29, %s1929_s0 }
 0x51b   :  { %p1543_p10 = pnand %p1541_p9, %p1538_p8 }
 0x51d   :  { %1546 = shalt.err (!%p1543_p10)
}
 0x51e   :  { %922 = dma.vmem_to_hbm [thread:$0]  %s920_s15, 128, %s1929_s0, [#allocation26]  }
 0x51f   :  { %1563 = dma.done.wait [#allocation4], 128  }
 0x520   :  { %1564 = vsyncadd [#allocation4], 4294967168 }
 0x521   :  { %1565 = dma.done.wait [#allocation26], 256  }
 0x522   :  { %1566 = vsyncadd [#allocation26], 4294967040 }
 0x523   :  { %932 = vsyncpa [#allocation3], 1 }
 0x524   :  { %933 = vsyncpa [#allocation8], 1 }
 0x525   :  { %934 = vsyncpa [#allocation11], 1 }
 0x526   :  { %935 = vsyncpa [#allocation14], 1 }
 0x527   :  { %936 = vsyncpa [#allocation17], 1 }
 0x528   :  { %937 = vsyncpa [#allocation20], 1 }
 0x529   :  { %938 = vsyncpa [#allocation23], 1 }
 0x52a   :  { %939 = vsyncpa [#allocation4], 1 }
 0x52b   :  { %940 = vsyncpa [#allocation26], 1 }
 0x52c   :  { %941 = vsyncpa [#allocation5], 1 }

// kernel: tpu_custom_call.1
= control target key start
LH: loop header
LB: loop body
LE: loop exit
PB: predicated region body
PF: predicated region fallthrough
CT: control target
= control target key end

     0   :  { %s1911_s0 = inlined_call_operand.hbm [shape: f32[2], index: 0, kind: input, shape index: {}]   ;;  %s1912_s1 = inlined_call_operand.hbm [shape: bf16[8,128], index: 1, kind: input, shape index: {}]   ;;  %s1913_s2 = inlined_call_operand.hbm [shape: bf16[128,256], index: 2, kind: input, shape index: {}]   ;;  %s1914_s3 = inlined_call_operand.hbm [shape: f32[1,128], index: 3, kind: input, shape index: {}]   ;;  %s1915_s4 = inlined_call_operand.hbm [shape: bf16[128,256], index: 4, kind: input, shape index: {}]   ;;  %s1916_s5 = inlined_call_operand.hbm [shape: f32[1,256], index: 5, kind: input, shape index: {}]   ;;  %s1917_s6 = inlined_call_operand.hbm [shape: bf16[128,128], index: 6, kind: input, shape index: {}]   ;;  %s1918_s7 = inlined_call_operand.hbm [shape: f32[1,128], index: 7, kind: input, shape index: {}]   ;;  %s1919_s8 = inlined_call_operand.hbm [shape: f32[1,128], index: 8, kind: input, shape index: {}]   ;;  %s1920_s9 = inlined_call_operand.hbm [shape: bf16[128,128], index: 9, kind: input, shape index: {}]   ;;  %s1921_s10 = inlined_call_operand.hbm [shape: f32[1,128], index: 10, kind: input, shape index: {}]   ;;  %s1922_s11 = inlined_call_operand.hbm [shape: bf16[128,128], index: 11, kind: input, shape index: {}]   ;;  %s1923_s12 = inlined_call_operand.hbm [shape: f32[1,128], index: 12, kind: input, shape index: {}]   ;;  %s1924_s13 = inlined_call_operand.hbm [shape: f32[8,128], index: 13, kind: output, shape index: {0}]   ;;  %s1925_s14 = inlined_call_operand.hbm [shape: f32[8,128], index: 14, kind: output, shape index: {1}]   ;;  %s1926_s15 = inlined_call_operand.hbm [shape: f32[8,128], index: 15, kind: output, shape index: {2}]  }
   0x1   :  { %1928 = sst [smem:[#allocation38_spill]] %s1926_s15 }
   0x2   :  { %21 = vsyncpa [#allocation5], 0 }
   0x3   :  { %22 = vsyncpa [#allocation3], 0 }
   0x4   :  { %23 = vsyncpa [#allocation8], 0 }
   0x5   :  { %24 = vsyncpa [#allocation11], 0 }
   0x6   :  { %25 = vsyncpa [#allocation14], 0 }
   0x7   :  { %26 = vsyncpa [#allocation17], 0 }
   0x8   :  { %27 = vsyncpa [#allocation20], 0 }
   0x9   :  { %28 = vsyncpa [#allocation23], 0 }
   0xa   :  { %29 = vsyncpa [#allocation4], 0 }
   0xb   :  { %30 = vsyncpa [#allocation26], 0  ;;  %s1567_s18 = smov [#allocation7]   ;;  %s1207_s22 = scalar_lea.hbm %s1913_s2, 2048 }
   0xc   :  { %s54_s19 = sshll.u32 %s1567_s18, 4  ;;  %p1208_p0 = scmp.ne.s32.totalorder %s1913_s2, %s1207_s22  ;;  %s55_s19 = int_to_ptr.vmem [resolvable:$true] %s54_s19 }
   0xd   :  { %p1211_p1 = scmp.lt.u32.totalorder %s1207_s22, %s1913_s2 }
   0xf   :  { %p1213_p2 = pnand %p1211_p1, %p1208_p0 }
  0x11   :  { %1216 = shalt.err (!%p1213_p2)
}
  0x12   :  { %s1217_s27 = scalar_lea.vmem %s55_s19, 2048  ;;  %p1222_p4 = scmp.lt.s32.totalorder %s55_s19, %s55_s19 }
  0x13   :  { %p1218_p3 = scmp.ne.s32.totalorder %s55_s19, %s1217_s27  ;;  %p1223_p5 = scmp.lt.s32.totalorder %s1217_s27, %s1217_s27 }
  0x15   :  { %p1224_p6 = por %p1223_p5, %p1222_p4 }
  0x17   :  { %p1225_p7 = pnand %p1224_p6, %p1218_p3 }
  0x19   :  { %1228 = shalt.err (!%p1225_p7)
}
  0x1a   :  { %s1568_s28 = smov 128   ;;  %s1569_s29 = smov 8  }
  0x1b   :  { %60 = dma.hbm_to_vmem [thread:$0]  %s1913_s2, 2048, %s55_s19, [#allocation8], %s1568_s28, %s1568_s28, %s1569_s29  }
  0x1c   :  { %s1570_s17 = smov [#allocation10]   ;;  %s1571_s20 = smov [#allocation13]  }
  0x1d   :  { %s76_s18 = sshll.u32 %s1570_s17, 4  ;;  %s98_s21 = sshll.u32 %s1571_s20, 4  ;;  %s77_s18 = int_to_ptr.vmem [resolvable:$true] %s76_s18  ;;  %s99_s21 = int_to_ptr.vmem [resolvable:$true] %s98_s21 }
  0x1e   :  { %s1229_s24 = scalar_lea.hbm %s1915_s4, 2048 }
  0x1f   :  { %p1230_p8 = scmp.ne.s32.totalorder %s1915_s4, %s1229_s24  ;;  %p1233_p9 = scmp.lt.u32.totalorder %s1229_s24, %s1915_s4 }
  0x21   :  { %p1235_p10 = pnand %p1233_p9, %p1230_p8 }
  0x23   :  { %1238 = shalt.err (!%p1235_p10)
}
  0x24   :  { %s1239_s2 = scalar_lea.vmem %s77_s18, 2048  ;;  %p1244_p12 = scmp.lt.s32.totalorder %s77_s18, %s77_s18 }
  0x25   :  { %p1240_p11 = scmp.ne.s32.totalorder %s77_s18, %s1239_s2  ;;  %p1245_p13 = scmp.lt.s32.totalorder %s1239_s2, %s1239_s2 }
  0x27   :  { %p1246_p0 = por %p1245_p13, %p1244_p12 }
  0x29   :  { %p1247_p1 = pnand %p1246_p0, %p1240_p11 }
  0x2b   :  { %1250 = shalt.err (!%p1247_p1)
}
  0x2c   :  { %82 = dma.hbm_to_vmem [thread:$0]  %s1915_s4, 2048, %s77_s18, [#allocation11], %s1568_s28, %s1568_s28, %s1569_s29  }
  0x2d   :  { %s1251_s20 = scalar_lea.hbm %s1917_s6, 1024 }
  0x2e   :  { %p1252_p2 = scmp.ne.s32.totalorder %s1917_s6, %s1251_s20  ;;  %p1255_p3 = scmp.lt.u32.totalorder %s1251_s20, %s1917_s6 }
  0x30   :  { %p1257_p4 = pnand %p1255_p3, %p1252_p2 }
  0x32   :  { %1260 = shalt.err (!%p1257_p4)
}
  0x33   :  { %s1261_s25 = scalar_lea.vmem %s99_s21, 1024  ;;  %p1266_p6 = scmp.lt.s32.totalorder %s99_s21, %s99_s21 }
  0x34   :  { %p1262_p5 = scmp.ne.s32.totalorder %s99_s21, %s1261_s25  ;;  %p1267_p7 = scmp.lt.s32.totalorder %s1261_s25, %s1261_s25 }
  0x36   :  { %p1268_p8 = por %p1267_p7, %p1266_p6 }
  0x38   :  { %p1269_p9 = pnand %p1268_p8, %p1262_p5 }
  0x3a   :  { %1272 = shalt.err (!%p1269_p9)
}
  0x3b   :  { %s1572_s4 = smov 64   ;;  %s1573_s28 = smov 4  }
  0x3c   :  { %104 = dma.hbm_to_vmem [thread:$0]  %s1917_s6, 1024, %s99_s21, [#allocation14], %s1572_s4, %s1572_s4, %s1573_s28  }
  0x3d   :  { %s1574_s26 = smov [#allocation16]   ;;  %s1575_s2 = smov [#allocation19]  }
  0x3e   :  { %s121_s27 = sshll.u32 %s1574_s26, 4  ;;  %s143_s19 = sshll.u32 %s1575_s2, 4  ;;  %s122_s27 = int_to_ptr.vmem [resolvable:$true] %s121_s27  ;;  %s144_s19 = int_to_ptr.vmem [resolvable:$true] %s143_s19 }
  0x3f   :  { %s1273_s17 = scalar_lea.hbm %s1919_s8, 16 }
  0x40   :  { %p1274_p10 = scmp.ne.s32.totalorder %s1919_s8, %s1273_s17  ;;  %p1277_p11 = scmp.lt.u32.totalorder %s1273_s17, %s1919_s8 }
  0x42   :  { %p1279_p12 = pnand %p1277_p11, %p1274_p10 }
  0x44   :  { %1282 = shalt.err (!%p1279_p12)
}
  0x45   :  { %s1283_s6 = scalar_lea.vmem %s122_s27, 16  ;;  %s1287_s21 = scalar_lea.vmem %s122_s27, 32 }
  0x46   :  { %p1284_p13 = scmp.ne.s32.totalorder %s122_s27, %s1283_s6  ;;  %p1288_p0 = scmp.lt.s32.totalorder %s122_s27, %s122_s27 }
  0x47   :  { %p1289_p1 = scmp.lt.s32.totalorder %s1287_s21, %s1283_s6 }
  0x49   :  { %p1290_p2 = por %p1289_p1, %p1288_p0 }
  0x4b   :  { %p1291_p3 = pnand %p1290_p2, %p1284_p13 }
  0x4d   :  { %1294 = shalt.err (!%p1291_p3)
}
  0x4e   :  { %124 = dma.hbm_to_vmem [thread:$0]  %s1919_s8, 16, %s122_s27, [#allocation17]  }
  0x4f   :  { %s1295_s26 = scalar_lea.hbm %s1921_s10, 16 }
  0x50   :  { %p1296_p4 = scmp.ne.s32.totalorder %s1921_s10, %s1295_s26  ;;  %p1299_p5 = scmp.lt.u32.totalorder %s1295_s26, %s1921_s10 }
  0x52   :  { %p1301_p6 = pnand %p1299_p5, %p1296_p4 }
  0x54   :  { %1304 = shalt.err (!%p1301_p6)
}
  0x55   :  { %s1305_s20 = scalar_lea.vmem %s144_s19, 16  ;;  %s1309_s15 = scalar_lea.vmem %s144_s19, 32 }
  0x56   :  { %p1306_p7 = scmp.ne.s32.totalorder %s144_s19, %s1305_s20  ;;  %p1310_p8 = scmp.lt.s32.totalorder %s144_s19, %s144_s19 }
  0x57   :  { %p1311_p9 = scmp.lt.s32.totalorder %s1309_s15, %s1305_s20 }
  0x59   :  { %p1312_p10 = por %p1311_p9, %p1310_p8 }
  0x5b   :  { %p1313_p11 = pnand %p1312_p10, %p1306_p7 }
  0x5d   :  { %1316 = shalt.err (!%p1313_p11)
}
  0x5e   :  { %146 = dma.hbm_to_vmem [thread:$0]  %s1921_s10, 16, %s144_s19, [#allocation20]  }
  0x5f   :  { %s1317_s6 = scalar_lea.hbm %s1911_s0, 16 }
  0x60   :  { %p1318_p12 = scmp.ne.s32.totalorder %s1911_s0, %s1317_s6  ;;  %p1321_p13 = scmp.lt.u32.totalorder %s1317_s6, %s1911_s0 }
  0x62   :  { %p1323_p0 = pnand %p1321_p13, %p1318_p12 }
  0x64   :  { %1326 = shalt.err (!%p1323_p0)
}
  0x65   :  { %s1576_s18 = smov [#allocation2]   ;;  %s1577_s10 = smov [#allocation6]  }
  0x66   :  { %38 = dma.hbm_to_smem %s1911_s0, 16, %s1576_s18, [#allocation5]  }
  0x67   :  { %s45_s19 = sshll.u32 %s1577_s10, 4  ;;  %s1578_s30 = smov [#allocation9]   ;;  %s46_s19 = int_to_ptr.vmem [resolvable:$true] %s45_s19 }
  0x68   :  { %s67_s16 = sshll.u32 %s1578_s30, 4  ;;  %s1327_s15 = scalar_lea.hbm %s1912_s1, 64  ;;  %s68_s16 = int_to_ptr.vmem [resolvable:$true] %s67_s16 }
  0x69   :  { %p1328_p1 = scmp.ne.s32.totalorder %s1912_s1, %s1327_s15  ;;  %p1331_p2 = scmp.lt.u32.totalorder %s1327_s15, %s1912_s1 }
  0x6b   :  { %p1333_p3 = pnand %p1331_p2, %p1328_p1 }
  0x6d   :  { %1336 = shalt.err (!%p1333_p3)
}
  0x6e   :  { %s1337_s0 = scalar_lea.vmem %s46_s19, 64  ;;  %p1342_p5 = scmp.lt.s32.totalorder %s46_s19, %s46_s19 }
  0x6f   :  { %p1338_p4 = scmp.ne.s32.totalorder %s46_s19, %s1337_s0  ;;  %p1343_p6 = scmp.lt.s32.totalorder %s1337_s0, %s1337_s0 }
  0x71   :  { %p1344_p7 = por %p1343_p6, %p1342_p5 }
  0x73   :  { %p1345_p8 = pnand %p1344_p7, %p1338_p4 }
  0x75   :  { %1348 = shalt.err (!%p1345_p8)
}
  0x76   :  { %48 = dma.hbm_to_vmem [thread:$0]  %s1912_s1, 64, %s46_s19, [#allocation3]  }
  0x77   :  { %s1349_s29 = scalar_lea.hbm %s1914_s3, 16 }
  0x78   :  { %p1350_p9 = scmp.ne.s32.totalorder %s1914_s3, %s1349_s29  ;;  %p1353_p10 = scmp.lt.u32.totalorder %s1349_s29, %s1914_s3 }
  0x7a   :  { %p1355_p11 = pnand %p1353_p10, %p1350_p9 }
  0x7c   :  { %1358 = shalt.err (!%p1355_p11)
}
  0x7d   :  { %s1359_s30 = scalar_lea.vmem %s68_s16, 16  ;;  %s1363_s17 = scalar_lea.vmem %s68_s16, 32 }
  0x7e   :  { %p1360_p12 = scmp.ne.s32.totalorder %s68_s16, %s1359_s30  ;;  %p1364_p13 = scmp.lt.s32.totalorder %s68_s16, %s68_s16 }
  0x7f   :  { %p1365_p0 = scmp.lt.s32.totalorder %s1363_s17, %s1359_s30 }
  0x81   :  { %p1366_p1 = por %p1365_p0, %p1364_p13 }
  0x83   :  { %p1367_p2 = pnand %p1366_p1, %p1360_p12 }
  0x85   :  { %1370 = shalt.err (!%p1367_p2)
}
  0x86   :  { %70 = dma.hbm_to_vmem [thread:$0]  %s1914_s3, 16, %s68_s16, [#allocation8]  }
  0x87   :  { %s1579_s20 = smov [#allocation12]   ;;  %s1580_s8 = smov [#allocation15]  }
  0x88   :  { %s89_s15 = sshll.u32 %s1579_s20, 4  ;;  %s111_s27 = sshll.u32 %s1580_s8, 4  ;;  %s90_s15 = int_to_ptr.vmem [resolvable:$true] %s89_s15  ;;  %s112_s27 = int_to_ptr.vmem [resolvable:$true] %s111_s27 }
  0x89   :  { %s1371_s0 = scalar_lea.hbm %s1916_s5, 32 }
  0x8a   :  { %p1372_p3 = scmp.ne.s32.totalorder %s1916_s5, %s1371_s0  ;;  %p1375_p4 = scmp.lt.u32.totalorder %s1371_s0, %s1916_s5 }
  0x8c   :  { %p1377_p5 = pnand %p1375_p4, %p1372_p3 }
  0x8e   :  { %1380 = shalt.err (!%p1377_p5)
}
  0x8f   :  { %s1381_s3 = scalar_lea.vmem %s90_s15, 32  ;;  %p1386_p7 = scmp.lt.s32.totalorder %s90_s15, %s90_s15 }
  0x90   :  { %p1382_p6 = scmp.ne.s32.totalorder %s90_s15, %s1381_s3  ;;  %p1387_p8 = scmp.lt.s32.totalorder %s1381_s3, %s1381_s3 }
  0x92   :  { %p1388_p9 = por %p1387_p8, %p1386_p7 }
  0x94   :  { %p1389_p10 = pnand %p1388_p9, %p1382_p6 }
  0x96   :  { %1392 = shalt.err (!%p1389_p10)
}
  0x97   :  { %92 = dma.hbm_to_vmem [thread:$0]  %s1916_s5, 32, %s90_s15, [#allocation11]  }
  0x98   :  { %s1393_s2 = scalar_lea.hbm %s1918_s7, 16 }
  0x99   :  { %p1394_p11 = scmp.ne.s32.totalorder %s1918_s7, %s1393_s2  ;;  %p1397_p12 = scmp.lt.u32.totalorder %s1393_s2, %s1918_s7 }
  0x9b   :  { %p1399_p13 = pnand %p1397_p12, %p1394_p11 }
  0x9d   :  { %1402 = shalt.err (!%p1399_p13)
}
  0x9e   :  { %s1403_s19 = scalar_lea.vmem %s112_s27, 16  ;;  %s1407_s20 = scalar_lea.vmem %s112_s27, 32 }
  0x9f   :  { %p1404_p0 = scmp.ne.s32.totalorder %s112_s27, %s1403_s19  ;;  %p1408_p1 = scmp.lt.s32.totalorder %s112_s27, %s112_s27 }
  0xa0   :  { %p1409_p2 = scmp.lt.s32.totalorder %s1407_s20, %s1403_s19 }
  0xa2   :  { %p1410_p3 = por %p1409_p2, %p1408_p1 }
  0xa4   :  { %p1411_p4 = pnand %p1410_p3, %p1404_p0 }
  0xa6   :  { %1414 = shalt.err (!%p1411_p4)
}
  0xa7   :  { %114 = dma.hbm_to_vmem [thread:$0]  %s1918_s7, 16, %s112_s27, [#allocation14]  }
  0xa8   :  { %s1581_s8 = smov [#allocation18]   ;;  %s1582_s23 = smov [#allocation21]  }
  0xa9   :  { %s130_s22 = sshll.u32 %s1581_s8, 4  ;;  %s152_s0 = sshll.u32 %s1582_s23, 4  ;;  %s131_s22 = int_to_ptr.vmem [resolvable:$true] %s130_s22  ;;  %s1793_s0 = int_to_ptr.vmem [resolvable:$true] %s152_s0 }
  0xaa   :  { %s1415_s24 = scalar_lea.hbm %s1920_s9, 1024 }
  0xab   :  { %p1416_p5 = scmp.ne.s32.totalorder %s1920_s9, %s1415_s24  ;;  %p1419_p6 = scmp.lt.u32.totalorder %s1415_s24, %s1920_s9 }
  0xad   :  { %p1421_p7 = pnand %p1419_p6, %p1416_p5 }
  0xaf   :  { %1424 = shalt.err (!%p1421_p7)
}
  0xb0   :  { %s1425_s7 = scalar_lea.vmem %s131_s22, 1024  ;;  %p1430_p9 = scmp.lt.s32.totalorder %s131_s22, %s131_s22 }
  0xb1   :  { %p1426_p8 = scmp.ne.s32.totalorder %s131_s22, %s1425_s7  ;;  %p1431_p10 = scmp.lt.s32.totalorder %s1425_s7, %s1425_s7 }
  0xb3   :  { %p1432_p11 = por %p1431_p10, %p1430_p9 }
  0xb5   :  { %p1433_p12 = pnand %p1432_p11, %p1426_p8 }
  0xb7   :  { %1436 = shalt.err (!%p1433_p12)
}
  0xb8   :  { %136 = dma.hbm_to_vmem [thread:$0]  %s1920_s9, 1024, %s131_s22, [#allocation17], %s1572_s4, %s1572_s4, %s1573_s28  }
  0xb9   :  { %s1437_s10 = scalar_lea.hbm %s1922_s11, 1024 }
  0xba   :  { %p1438_p13 = scmp.ne.s32.totalorder %s1922_s11, %s1437_s10  ;;  %p1441_p0 = scmp.lt.u32.totalorder %s1437_s10, %s1922_s11 }
  0xbc   :  { %p1443_p1 = pnand %p1441_p0, %p1438_p13 }
  0xbe   :  { %1446 = shalt.err (!%p1443_p1)
}
  0xbf   :  { %s1447_s20 = scalar_lea.vmem %s1793_s0, 1024  ;;  %p1452_p3 = scmp.lt.s32.totalorder %s1793_s0, %s1793_s0 }
  0xc0   :  { %p1448_p2 = scmp.ne.s32.totalorder %s1793_s0, %s1447_s20  ;;  %p1453_p4 = scmp.lt.s32.totalorder %s1447_s20, %s1447_s20 }
  0xc2   :  { %p1454_p5 = por %p1453_p4, %p1452_p3 }
  0xc4   :  { %p1455_p6 = pnand %p1454_p5, %p1448_p2 }
  0xc6   :  { %1458 = shalt.err (!%p1455_p6)
}
  0xc7   :  { %158 = dma.hbm_to_vmem [thread:$0]  %s1922_s11, 1024, %s1793_s0, [#allocation20], %s1572_s4, %s1572_s4, %s1573_s28  }
  0xc8   :  { %s1583_s15 = smov [#allocation22]   ;;  %s1459_s6 = scalar_lea.hbm %s1923_s12, 16 }
  0xc9   :  { %s165_s8 = sshll.u32 %s1583_s15, 4  ;;  %p1460_p7 = scmp.ne.s32.totalorder %s1923_s12, %s1459_s6  ;;  %s166_s8 = int_to_ptr.vmem [resolvable:$true] %s165_s8 }
  0xca   :  { %p1463_p8 = scmp.lt.u32.totalorder %s1459_s6, %s1923_s12 }
  0xcc   :  { %p1465_p9 = pnand %p1463_p8, %p1460_p7 }
  0xce   :  { %1468 = shalt.err (!%p1465_p9)
}
  0xcf   :  { %s1469_s16 = scalar_lea.vmem %s166_s8, 16  ;;  %s1473_s11 = scalar_lea.vmem %s166_s8, 32 }
  0xd0   :  { %p1470_p10 = scmp.ne.s32.totalorder %s166_s8, %s1469_s16  ;;  %p1474_p11 = scmp.lt.s32.totalorder %s166_s8, %s166_s8 }
  0xd1   :  { %p1475_p12 = scmp.lt.s32.totalorder %s1473_s11, %s1469_s16 }
  0xd3   :  { %p1476_p13 = por %p1475_p12, %p1474_p11 }
  0xd5   :  { %p1477_p0 = pnand %p1476_p13, %p1470_p10 }
  0xd7   :  { %1480 = shalt.err (!%p1477_p0)
}
  0xd8   :  { %168 = dma.hbm_to_vmem [thread:$0]  %s1923_s12, 16, %s166_s8, [#allocation23]  }
  0xd9   :  { %1547 = dma.done.wait [#allocation5], 16  }
  0xda   :  { %1548 = vsyncadd [#allocation5], 4294967280 }
  0xdb   :  { %1549 = dma.done.wait [#allocation3], 64  }
  0xdc   :  { %1550 = vsyncadd [#allocation3], 4294967232 }
  0xdd   :  { %1551 = dma.done.wait [#allocation8], 2064  }
  0xde   :  { %1552 = vsyncadd [#allocation8], 4294965232 }
  0xdf   :  { %1553 = dma.done.wait [#allocation11], 2080  }
  0xe0   :  { %1554 = vsyncadd [#allocation11], 4294965216 }
  0xe1   :  { %1555 = dma.done.wait [#allocation14], 1040  }
  0xe2   :  { %1556 = vsyncadd [#allocation14], 4294966256 }
  0xe3   :  { %1557 = dma.done.wait [#allocation17], 1040  }
  0xe4   :  { %1558 = vsyncadd [#allocation17], 4294966256 }
  0xe5   :  { %1559 = dma.done.wait [#allocation20], 1040  }
  0xe6   :  { %1560 = vsyncadd [#allocation20], 4294966256 }
  0xe7   :  { %1561 = dma.done.wait [#allocation23], 16  }
  0xe8   :  { %1562 = vsyncadd [#allocation23], 4294967280 }
  0xe9   :  { %208 = sfence }
  0xea   :  { %v1117_v0 = vld [vmem:[#allocation7 + $0x4] ss:$8 sps:$4 sm:$0xff]   ;;  %v1119_v1 = vld [vmem:[#allocation7] ss:$8 sps:$4 sm:$0xff]   ;;  %v1584_v2 = vmov 0   ;;  %v1585_v34 = vmov 0.0   ;;  %v381_v62 = vlaneseq }
  0xeb   :  { %339 = vmatprep.mubr.bf16.mxu0 %v1584_v2  ;;  %503 = vmatprep.mubr.bf16.mxu1 %v1584_v2  ;;  %v1120_v3 = vld [vmem:[#allocation7 + $0x14] ss:$8 sps:$4 sm:$0xff]   ;;  %v1122_v4 = vld [vmem:[#allocation7 + $0x10] ss:$8 sps:$4 sm:$0xff]   ;;  %v1123_v5 = vld [vmem:[#allocation7 + $0x24] ss:$8 sps:$4 sm:$0xff]  }
  0xec   :  { %307 = vmatprep.subr.bf16.mxu0 %v1117_v0  ;;  %v1125_v6 = vld [vmem:[#allocation7 + $0x20] ss:$8 sps:$4 sm:$0xff]   ;;  %v1126_v7 = vld [vmem:[#allocation7 + $0x34] ss:$8 sps:$4 sm:$0xff]   ;;  %v1128_v8 = vld [vmem:[#allocation7 + $0x30] ss:$8 sps:$4 sm:$0xff]  }
  0xed   :  { %308 = vmatpush1.bf16.msra.mxu0 %v1119_v1  ;;  %v1129_v9 = vld [vmem:[#allocation7 + $0x44] ss:$8 sps:$4 sm:$0xff]   ;;  %v1131_v11 = vld [vmem:[#allocation7 + $0x40] ss:$8 sps:$4 sm:$0xff]   ;;  %v1132_v12 = vld [vmem:[#allocation7 + $0x54] ss:$8 sps:$4 sm:$0xff]  }
  0xee   :  { %309 = vmatprep.subr.bf16.mxu0 %v1120_v3  ;;  %v1141_v10 = vld [vmem:[#allocation10 + $0x4] ss:$8 sps:$4 sm:$0xff]   ;;  %v1138_v16 = vld [vmem:[#allocation7 + $0x74] ss:$8 sps:$4 sm:$0xff]   ;;  %v1143_v19 = vld [vmem:[#allocation10] ss:$8 sps:$4 sm:$0xff]  }
  0xef   :  { %471 = vmatprep.subr.bf16.mxu1 %v1141_v10  ;;  %v1134_v13 = vld [vmem:[#allocation7 + $0x50] ss:$8 sps:$4 sm:$0xff]   ;;  %v1135_v14 = vld [vmem:[#allocation7 + $0x64] ss:$8 sps:$4 sm:$0xff]   ;;  %v1137_v15 = vld [vmem:[#allocation7 + $0x60] ss:$8 sps:$4 sm:$0xff]  }
  0xf0   :  { %v1140_v17 = vld [vmem:[#allocation7 + $0x70] ss:$8 sps:$4 sm:$0xff]   ;;  %v210_v18 = vld [vmem:[#allocation6] sm:$0xf]  ;;  %472 = vmatpush1.bf16.msra.mxu1 %v1143_v19  ;;  %v1149_v23 = vld [vmem:[#allocation10 + $0x20] ss:$8 sps:$4 sm:$0xff]  }
  0xf1   :  { %310 = vmatpush1.bf16.msra.mxu0 %v1122_v4  ;;  %v1144_v20 = vld [vmem:[#allocation10 + $0x14] ss:$8 sps:$4 sm:$0xff]   ;;  %v1146_v21 = vld [vmem:[#allocation10 + $0x10] ss:$8 sps:$4 sm:$0xff]   ;;  %v1147_v22 = vld [vmem:[#allocation10 + $0x24] ss:$8 sps:$4 sm:$0xff]  }
  0xf2   :  { %311 = vmatprep.subr.bf16.mxu0 %v1123_v5  ;;  %473 = vmatprep.subr.bf16.mxu1 %v1144_v20  ;;  %v1150_v24 = vld [vmem:[#allocation10 + $0x34] ss:$8 sps:$4 sm:$0xff]   ;;  %v1152_v25 = vld [vmem:[#allocation10 + $0x30] ss:$8 sps:$4 sm:$0xff]   ;;  %v1153_v26 = vld [vmem:[#allocation10 + $0x44] ss:$8 sps:$4 sm:$0xff]  }
  0xf3   :  { %v1155_v27 = vld [vmem:[#allocation10 + $0x40] ss:$8 sps:$4 sm:$0xff]   ;;  %v1156_v28 = vld [vmem:[#allocation10 + $0x54] ss:$8 sps:$4 sm:$0xff]   ;;  %v1158_v29 = vld [vmem:[#allocation10 + $0x50] ss:$8 sps:$4 sm:$0xff]  }
  0xf4   :  { %474 = vmatpush1.bf16.msra.mxu1 %v1146_v21  ;;  %v1159_v30 = vld [vmem:[#allocation10 + $0x64] ss:$8 sps:$4 sm:$0xff]   ;;  %v1161_v31 = vld [vmem:[#allocation10 + $0x60] ss:$8 sps:$4 sm:$0xff]   ;;  %v1162_v32 = vld [vmem:[#allocation10 + $0x74] ss:$8 sps:$4 sm:$0xff]  }
  0xf5   :  { %312 = vmatpush1.bf16.msra.mxu0 %v1125_v6  ;;  %475 = vmatprep.subr.bf16.mxu1 %v1147_v22  ;;  %v1164_v33 = vld [vmem:[#allocation10 + $0x70] ss:$8 sps:$4 sm:$0xff]   ;;  %v958_v35 = vld [vmem:[#allocation9] ss:$0 sm:$0xff]  ;;  %v1165_v46 = vld [vmem:[#allocation13] sm:$0xff]   ;;  %vm1586_vm0 = vmmov 0  }
  0xf6   :  { %313 = vmatprep.subr.bf16.mxu0 %v1126_v7  ;;  %v1166_v47 = vld [vmem:[#allocation18] sm:$0xff]   ;;  %v1168_v49 = vld [vmem:[#allocation18 + $0x8] sm:$0xff]   ;;  %v1170_v51 = vld [vmem:[#allocation18 + $0x10] sm:$0xff]   ;;  %v382_v63 = vshrl.u32 %v381_v62, 7  ;;  %s646_s12 = sld [smem:[#allocation2]]  ;;  %s1587_s0 = smov [#allocation24]  }
  0xf7   :  { %v1167_v48 = vld [vmem:[#allocation13 + $0x8] sm:$0xff]   ;;  %v1169_v50 = vld [vmem:[#allocation13 + $0x10] sm:$0xff]   ;;  %v1171_v52 = vld [vmem:[#allocation13 + $0x18] sm:$0xff]   ;;  %s899_s29 = sshll.u32 %s1587_s0, 4  ;;  %s900_s29 = int_to_ptr.vmem [resolvable:$true] %s899_s29 }
  0xf8   :  { %476 = vmatpush1.bf16.msra.mxu1 %v1149_v23  ;;  %v1172_v53 = vld [vmem:[#allocation18 + $0x18] sm:$0xff]   ;;  %v1174_v55 = vld [vmem:[#allocation18 + $0x20] sm:$0xff]   ;;  %v1176_v57 = vld [vmem:[#allocation18 + $0x28] sm:$0xff]   ;;  %v383_v0 = vsub.s32 0, %v382_v63  ;;  %v387_v2 = vsub.s32 1, %v382_v63  ;;  %s1481_s7 = scalar_lea.vmem %s900_s29, 128  ;;  %p1486_p2 = scmp.lt.s32.totalorder %s900_s29, %s900_s29 }
  0xf9   :  { %314 = vmatpush1.bf16.msra.mxu0 %v1128_v8  ;;  %477 = vmatprep.subr.bf16.mxu1 %v1150_v24  ;;  %v1173_v54 = vld [vmem:[#allocation13 + $0x20] sm:$0xff]   ;;  %v1175_v56 = vld [vmem:[#allocation13 + $0x28] sm:$0xff]   ;;  %v1177_v58 = vld [vmem:[#allocation13 + $0x30] sm:$0xff]   ;;  %p1482_p1 = scmp.ne.s32.totalorder %s900_s29, %s1481_s7  ;;  %p1487_p3 = scmp.lt.s32.totalorder %s1481_s7, %s1481_s7 }
  0xfa   :  { %315 = vmatprep.subr.bf16.mxu0 %v1129_v9  ;;  %v1178_v59 = vld [vmem:[#allocation18 + $0x30] sm:$0xff]   ;;  %v1180_v61 = vld [vmem:[#allocation18 + $0x38] sm:$0xff]  }
  0xfb   :  { %v1179_v60 = vld [vmem:[#allocation13 + $0x38] sm:$0xff]   ;;  %v1182_v22 = vld [vmem:[#allocation21 + $0x8] sm:$0xff]   ;;  %p1488_p4 = por %p1487_p3, %p1486_p2 }
  0xfc   :  { %478 = vmatpush1.bf16.msra.mxu1 %v1152_v25  ;;  %v379_v1 = vld [vmem:[#allocation12] sm:$0x3]  ;;  %v1183_v23 = vld [vmem:[#allocation21 + $0x10] sm:$0xff]   ;;  %v1185_v25 = vld [vmem:[#allocation21 + $0x20] sm:$0xff]  }
  0xfd   :  { %316 = vmatpush1.bf16.msra.mxu0 %v1131_v11  ;;  %479 = vmatprep.subr.bf16.mxu1 %v1153_v26  ;;  %v384_v3 = vrot.slane %v379_v1, %v383_v0  ;;  %v388_v4 = vrot.slane %v379_v1, %v387_v2  ;;  %v1184_v24 = vld [vmem:[#allocation21 + $0x18] sm:$0xff]   ;;  %v1186_v26 = vld [vmem:[#allocation21 + $0x28] sm:$0xff]   ;;  %p1489_p5 = pnand %p1488_p4, %p1482_p1 }
  0xfe   :  { %317 = vmatprep.subr.bf16.mxu0 %v1132_v12 }
 0x100   :  { %480 = vmatpush1.bf16.msra.mxu1 %v1155_v27  ;;  %v1187_v27 = vld [vmem:[#allocation21 + $0x30] sm:$0xff]  }
 0x101   :  { %318 = vmatpush1.bf16.msra.mxu0 %v1134_v13  ;;  %481 = vmatprep.subr.bf16.mxu1 %v1156_v28  ;;  %v1188_v28 = vld [vmem:[#allocation21 + $0x38] sm:$0xff]  }
 0x102   :  { %319 = vmatprep.subr.bf16.mxu0 %v1135_v14 }
 0x104   :  { %482 = vmatpush1.bf16.msra.mxu1 %v1158_v29  ;;  %v978_v29 = vld [vmem:[#allocation15] ss:$0 sm:$0xff] }
 0x105   :  { %320 = vmatpush1.bf16.msra.mxu0 %v1137_v15  ;;  %483 = vmatprep.subr.bf16.mxu1 %v1159_v30  ;;  %v988_v30 = vld [vmem:[#allocation19] ss:$0 sm:$0xff] }
 0x106   :  { %321 = vmatprep.subr.bf16.mxu0 %v1138_v16 }
 0x108   :  { %484 = vmatpush1.bf16.msra.mxu1 %v1161_v31 }
 0x109   :  { %322 = vmatpush1.bf16.msra.mxu0 %v1140_v17  ;;  %485 = vmatprep.subr.bf16.mxu1 %v1162_v32 }
 0x10a   :  { %1034 = vmatprep.subr.bf16.mxu0 %v1585_v34 }
 0x10c   :  { %340 = vmatmul.mubr.bf16.vlgmr.msra.gmra.mrb[0].mxu0 %v210_v18  ;;  %486 = vmatpush1.bf16.msra.mxu1 %v1164_v33  ;;  %v1181_v18 = vld [vmem:[#allocation21] sm:$0xff]  }
 0x10d   :  { %1054 = vmatprep.subr.bf16.mxu1 %v1585_v34  ;;  %1035 = vmatpush3.bf16.msra.mxu0 %v1165_v46 }
 0x10e   :  { %1036 = vmatprep.subr.bf16.mxu0 %v1585_v34  ;;  %1050 = vmatprep.mubr.msk.bf16.mxu0 %vm1586_vm0, %v1585_v34 }
 0x111   :  { %1037 = vmatpush3.bf16.msra.mxu0 %v1167_v48 }
 0x112   :  { %1038 = vmatprep.subr.bf16.mxu0 %v1585_v34 }
 0x115   :  { %1039 = vmatpush3.bf16.msra.mxu0 %v1169_v50 }
 0x116   :  { %1040 = vmatprep.subr.bf16.mxu0 %v1585_v34 }
 0x119   :  { %1041 = vmatpush3.bf16.msra.mxu0 %v1171_v52 }
 0x11a   :  { %1042 = vmatprep.subr.bf16.mxu0 %v1585_v34 }
 0x11d   :  { %1043 = vmatpush3.bf16.msra.mxu0 %v1173_v54 }
 0x11e   :  { %1044 = vmatprep.subr.bf16.mxu0 %v1585_v34 }
 0x121   :  { %1045 = vmatpush3.bf16.msra.mxu0 %v1175_v56 }
 0x122   :  { %1046 = vmatprep.subr.bf16.mxu0 %v1585_v34 }
 0x125   :  { %1047 = vmatpush3.bf16.msra.mxu0 %v1177_v58 }
 0x126   :  { %1048 = vmatprep.subr.bf16.mxu0 %v1585_v34 }
 0x129   :  { %1049 = vmatpush3.bf16.msra.mxu0 %v1179_v60 }
 0x12a   :  { %1074 = vmatprep.subr.bf16.mxu0 %v1585_v34 }
 0x1df   :  { %v341_v36 = vpop.f32.mrb[0].mxu0 }
 0x1e0   :  { %v355_v37 = vadd.f32 %v958_v35, %v341_v36  ;;  %v1844_v38 = vpop.f32.mrb[1].mxu0 }
 0x1e1   :  { %v345_v39 = vpop.f32.mrb[2].mxu0 }
 0x1e2   :  { %v959_v40 = vmul.f32 -1.442695, %v355_v37  ;;  %v346_v41 = vpop.f32.mrb[3].mxu0 }
 0x1e4   :  { %1189 = vpow2.f32 %v959_v40 }
 0x1ee   :  { %v1190_v42 = vpop.eup %1189 }
 0x1ef   :  { %v359_v43 = vadd.f32 1.0, %v1190_v42  ;;  %v987_v42 = vld [vmem:[#allocation16] ss:$0 sm:$0xff] }
 0x1f1   :  { %1191 = vrcp.f32 %v359_v43 }
 0x1fb   :  { %v1192_v44 = vpop.eup %1191 }
 0x1fc   :  { %v362_v45 = vpack.c.bf16 %v1192_v44, %v1192_v44 }
 0x1fe   :  { %504 = vmatmul.mubr.bf16.vlgmr.msra.gmra.mrb[0].mxu1 %v362_v45 }
 0x1ff   :  { %1055 = vmatpush3.bf16.msra.mxu1 %v1166_v47  ;;  %1070 = vmatprep.mubr.msk.bf16.mxu1 %vm1586_vm0, %v1585_v34  ;;  %v647_v47 = vstv %s646_s12 }
 0x200   :  { %1056 = vmatprep.subr.bf16.mxu1 %v1585_v34 }
 0x203   :  { %1057 = vmatpush3.bf16.msra.mxu1 %v1168_v49 }
 0x204   :  { %1058 = vmatprep.subr.bf16.mxu1 %v1585_v34 }
 0x207   :  { %1059 = vmatpush3.bf16.msra.mxu1 %v1170_v51 }
 0x208   :  { %1060 = vmatprep.subr.bf16.mxu1 %v1585_v34 }
 0x20b   :  { %1061 = vmatpush3.bf16.msra.mxu1 %v1172_v53 }
 0x20c   :  { %1062 = vmatprep.subr.bf16.mxu1 %v1585_v34 }
 0x20f   :  { %1063 = vmatpush3.bf16.msra.mxu1 %v1174_v55 }
 0x210   :  { %1064 = vmatprep.subr.bf16.mxu1 %v1585_v34 }
 0x213   :  { %1065 = vmatpush3.bf16.msra.mxu1 %v1176_v57 }
 0x214   :  { %1066 = vmatprep.subr.bf16.mxu1 %v1585_v34 }
 0x217   :  { %1067 = vmatpush3.bf16.msra.mxu1 %v1178_v59 }
 0x218   :  { %1068 = vmatprep.subr.bf16.mxu1 %v1585_v34 }
 0x21b   :  { %1069 = vmatpush3.bf16.msra.mxu1 %v1180_v61 }
 0x2d1   :  { %v505_v5 = vpop.f32.mrb[0].mxu1 }
 0x2d2   :  { %v506_v6 = vadd.f32 %v505_v5, %v384_v3  ;;  %v507_v7 = vpop.f32.mrb[1].mxu1 }
 0x2d3   :  { %v508_v8 = vadd.f32 %v507_v7, %v388_v4  ;;  %v509_v9 = vpop.f32.mrb[2].mxu1 }
 0x2d4   :  { %v976_v10 = vmul.f32 -1.442695, %v506_v6  ;;  %v510_v11 = vpop.f32.mrb[3].mxu1 }
 0x2d5   :  { %v977_v12 = vmul.f32 -1.442695, %v508_v8 }
 0x2d6   :  { %1193 = vpow2.f32 %v976_v10 }
 0x2d7   :  { %1195 = vpow2.f32 %v977_v12 }
 0x2e0   :  { %v1194_v13 = vpop.eup %1193 }
 0x2e1   :  { %v1196_v14 = vpop.eup %1195  ;;  %v518_v15 = vadd.f32 1.0, %v1194_v13 }
 0x2e2   :  { %v519_v16 = vadd.f32 1.0, %v1196_v14 }
 0x2e3   :  { %1197 = vrcp.f32 %v518_v15 }
 0x2e4   :  { %1199 = vrcp.f32 %v519_v16 }
 0x2ed   :  { %v1198_v17 = vpop.eup %1197 }
 0x2ee   :  { %v1200_v19 = vpop.eup %1199  ;;  %v524_v20 = vpack.c.bf16 %v1198_v17, %v1198_v17 }
 0x2ef   :  { %v650_v21 = vpack.c.bf16 %v1200_v19, %v1200_v19 }
 0x2f0   :  { %1051 = vmatmul.mubr.bf16.vlgmr.msra.gmra.mrb[4].mxu0 %v524_v20 }
 0x2f1   :  { %1071 = vmatmul.mubr.bf16.vlgmr.msra.gmra.mrb[4].mxu1 %v650_v21  ;;  %1075 = vmatpush3.bf16.msra.mxu0 %v1181_v18 }
 0x2f2   :  { %1076 = vmatprep.subr.bf16.mxu0 %v1585_v34  ;;  %1090 = vmatprep.mubr.msk.bf16.mxu0 %vm1586_vm0, %v1585_v34 }
 0x2f5   :  { %1077 = vmatpush3.bf16.msra.mxu0 %v1182_v22 }
 0x2f6   :  { %1078 = vmatprep.subr.bf16.mxu0 %v1585_v34 }
 0x2f9   :  { %1079 = vmatpush3.bf16.msra.mxu0 %v1183_v23 }
 0x2fa   :  { %1080 = vmatprep.subr.bf16.mxu0 %v1585_v34 }
 0x2fd   :  { %1081 = vmatpush3.bf16.msra.mxu0 %v1184_v24 }
 0x2fe   :  { %1082 = vmatprep.subr.bf16.mxu0 %v1585_v34 }
 0x301   :  { %1083 = vmatpush3.bf16.msra.mxu0 %v1185_v25 }
 0x302   :  { %1084 = vmatprep.subr.bf16.mxu0 %v1585_v34 }
 0x305   :  { %1085 = vmatpush3.bf16.msra.mxu0 %v1186_v26 }
 0x306   :  { %1086 = vmatprep.subr.bf16.mxu0 %v1585_v34 }
 0x309   :  { %1087 = vmatpush3.bf16.msra.mxu0 %v1187_v27 }
 0x30a   :  { %1088 = vmatprep.subr.bf16.mxu0 %v1585_v34 }
 0x30d   :  { %1089 = vmatpush3.bf16.msra.mxu0 %v1188_v28 }
 0x3c3   :  { %v630_v31 = vpop.f32.mrb[4].mxu0 }
 0x3c4   :  { %v1052_v32 = vpop.f32.mrb[5].mxu0  ;;  %v756_v33 = vpop.f32.mrb[4].mxu1  ;;  %v631_v35 = vadd.f32 %v978_v29, %v630_v31 }
 0x3c5   :  { %v757_v36 = vadd.f32 %v988_v30, %v756_v33  ;;  %v633_v37 = vpop.f32.mrb[6].mxu0  ;;  %v1072_v39 = vpop.f32.mrb[5].mxu1 }
 0x3c6   :  { %v1053_v40 = vpop.f32.mrb[7].mxu0  ;;  %v759_v41 = vpop.f32.mrb[6].mxu1  ;;  %v643_v45 = vmul.f32 %v987_v42, %v631_v35 }
 0x3c7   :  { %v777_v43 = vpack.c.bf16 %v757_v36, %v757_v36  ;;  %762 = vmax.xlane.f32.xlu0 %v757_v36  ;;  %v1073_v44 = vpop.f32.mrb[7].mxu1 }
 0x3c9   :  { %1091 = vmatmul.mubr.bf16.vlgmr.msra.gmra.mrb[8].mxu0 %v777_v43 }
 0x3cb   :  { %644 = vadd.xlane.f32.xlu0 %v643_v45 }
 0x454   :  { %v763_v34 = vpop.xlane.xlu0 %762 }
 0x455   :  { %v764_v46 = vsub.f32 %v757_v36, %v763_v34 }
 0x457   :  { %v765_v48 = vmul.f32 1.442695, %v764_v46 }
 0x458   :  { %v645_v49 = vpop.xlane.xlu0 %644 }
 0x459   :  { %v648_v50 = vadd.f32 %v647_v47, %v645_v49  ;;  %1201 = vpow2.f32 %v765_v48 }
 0x45b   :  { %649 = vst [vmem:[#allocation24] sm:$0xff] %v648_v50 }
 0x463   :  { %v1202_v51 = vpop.eup %1201 }
 0x464   :  { %767 = vadd.xlane.f32.xlu1 %v1202_v51 }
 0x465   :  { %1492 = shalt.err (!%p1489_p5)
}
 0x466   :  { %s1493_s26 = scalar_lea.hbm %s1924_s13, 128 }
 0x467   :  { %p1494_p6 = scmp.ne.s32.totalorder %s1924_s13, %s1493_s26  ;;  %p1497_p7 = scmp.lt.u32.totalorder %s1493_s26, %s1924_s13 }
 0x469   :  { %p1499_p8 = pnand %p1497_p7, %p1494_p6 }
 0x46b   :  { %1502 = shalt.err (!%p1499_p8)
}
 0x46c   :  { %902 = dma.vmem_to_hbm [thread:$0]  %s900_s29, 128, %s1924_s13, [#allocation4]   ;;  %v1006_v56 = vld [vmem:[#allocation22] ss:$0 sm:$0xff] }
 0x46d   :  { %s997_s20 = sld [smem:[#allocation2 + $0x1]]  ;;  %s1588_s9 = smov [#allocation25]  }
 0x46e   :  { %s909_s13 = sshll.u32 %s1588_s9, 4  ;;  %s1589_s5 = smov [#allocation27]   ;;  %s910_s13 = int_to_ptr.vmem [resolvable:$true] %s909_s13 }
 0x46f   :  { %s919_s15 = sshll.u32 %s1589_s5, 4  ;;  %s1503_s8 = scalar_lea.vmem %s910_s13, 128  ;;  %s920_s15 = int_to_ptr.vmem [resolvable:$true] %s919_s15 }
 0x470   :  { %p1504_p9 = scmp.ne.s32.totalorder %s910_s13, %s1503_s8  ;;  %p1508_p10 = scmp.lt.s32.totalorder %s910_s13, %s910_s13 }
 0x471   :  { %p1509_p11 = scmp.lt.s32.totalorder %s1503_s8, %s1503_s8 }
 0x473   :  { %v774_v52 = vstv %s997_s20  ;;  %p1510_p12 = por %p1509_p11, %p1508_p10 }
 0x474   :  { %v775_v53 = vmul.f32 %v774_v52, %v648_v50 }
 0x475   :  { %p1511_p13 = pnand %p1510_p12, %p1504_p9 }
 0x476   :  { %v776_v54 = vadd.f32 %v775_v53, %v1844_v38 }
 0x49c   :  { %v876_v55 = vpop.f32.mrb[8].mxu0 }
 0x49d   :  { %v882_v57 = vadd.f32 %v876_v55, %v776_v54  ;;  %v1092_v58 = vpop.f32.mrb[9].mxu0 }
 0x49e   :  { %v879_v59 = vpop.f32.mrb[10].mxu0 }
 0x49f   :  { %v890_v60 = vadd.f32 %v1006_v56, %v882_v57  ;;  %v1093_v61 = vpop.f32.mrb[11].mxu0 }
 0x4a1   :  { %1203 = vtanh.f32 %v890_v60 }
 0x4ab   :  { %v1204_v62 = vpop.eup %1203 }
 0x4ac   :  { %892 = vst [vmem:[#allocation27] sm:$0xff] %v1204_v62 }
 0x4f1   :  { %v768_v63 = vpop.xlane.xlu1 %767 }
 0x4f2   :  { %1205 = vlog2.f32 %v768_v63 }
 0x4fc   :  { %v1206_v0 = vpop.eup %1205 }
 0x4fd   :  { %v770_v1 = vmul.f32 0.6931472, %v1206_v0 }
 0x4ff   :  { %v771_v2 = vsub.f32 %v764_v46, %v770_v1 }
 0x501   :  { %772 = vst [vmem:[#allocation25] sm:$0xff] %v771_v2 }
 0x502   :  { %1514 = shalt.err (!%p1511_p13)
}
 0x503   :  { %s1515_s6 = scalar_lea.hbm %s1925_s14, 128 }
 0x504   :  { %p1516_p0 = scmp.ne.s32.totalorder %s1925_s14, %s1515_s6  ;;  %p1519_p1 = scmp.lt.u32.totalorder %s1515_s6, %s1925_s14 }
 0x506   :  { %p1521_p2 = pnand %p1519_p1, %p1516_p0 }
 0x508   :  { %1524 = shalt.err (!%p1521_p2)
}
 0x509   :  { %912 = dma.vmem_to_hbm [thread:$0]  %s910_s13, 128, %s1925_s14, [#allocation26]  }
 0x50a   :  { %s1525_s4 = scalar_lea.vmem %s920_s15, 128  ;;  %p1530_p4 = scmp.lt.s32.totalorder %s920_s15, %s920_s15 }
 0x50b   :  { %p1526_p3 = scmp.ne.s32.totalorder %s920_s15, %s1525_s4  ;;  %p1531_p5 = scmp.lt.s32.totalorder %s1525_s4, %s1525_s4 }
 0x50d   :  { %p1532_p6 = por %p1531_p5, %p1530_p4 }
 0x50f   :  { %p1533_p7 = pnand %p1532_p6, %p1526_p3 }
 0x511   :  { %1536 = shalt.err (!%p1533_p7)
}
 0x512   :  { %s1929_s0 = sld [smem:[#allocation38_spill]] }
 0x518   :  { %s1537_s29 = scalar_lea.hbm %s1929_s0, 128 }
 0x519   :  { %p1538_p8 = scmp.ne.s32.totalorder %s1929_s0, %s1537_s29  ;;  %p1541_p9 = scmp.lt.u32.totalorder %s1537_s29, %s1929_s0 }
 0x51b   :  { %p1543_p10 = pnand %p1541_p9, %p1538_p8 }
 0x51d   :  { %1546 = shalt.err (!%p1543_p10)
}
 0x51e   :  { %922 = dma.vmem_to_hbm [thread:$0]  %s920_s15, 128, %s1929_s0, [#allocation26]  }
 0x51f   :  { %1563 = dma.done.wait [#allocation4], 128  }
 0x520   :  { %1564 = vsyncadd [#allocation4], 4294967168 }
 0x521   :  { %1565 = dma.done.wait [#allocation26], 256  }
 0x522   :  { %1566 = vsyncadd [#allocation26], 4294967040 }
 0x523   :  { %932 = vsyncpa [#allocation3], 1 }
 0x524   :  { %933 = vsyncpa [#allocation8], 1 }
 0x525   :  { %934 = vsyncpa [#allocation11], 1 }
 0x526   :  { %935 = vsyncpa [#allocation14], 1 }
 0x527   :  { %936 = vsyncpa [#allocation17], 1 }
 0x528   :  { %937 = vsyncpa [#allocation20], 1 }
 0x529   :  { %938 = vsyncpa [#allocation23], 1 }
 0x52a   :  { %939 = vsyncpa [#allocation4], 1 }
 0x52b   :  { %940 = vsyncpa [#allocation26], 1 }
 0x52c   :  { %941 = vsyncpa [#allocation5], 1 }

</bundles_post_ra>
